<compile_context>
chip_gen: v5e
topology: v5e:2x2
jax: 0.10.0
libtpu: 0.0.40
codegen_flags: <defaults>
</compile_context>

<pallas_src>
import jax
import jax.numpy as jnp
from jax.experimental import pallas as pl
from jax.experimental.pallas import tpu as pltpu


def rpn_kernel(x_ref, w3_ref, b3_ref, wh_ref, bh_ref, out_ref):
    """One grid step = one (batch, row-tile) halo band.

    x_ref  : (th+2, W+2, Cin)  bf16  zero-padded input row band (halo = 1)
    w3_ref : (9*Cin, Cmid)     bf16  3x3 conv weights, taps folded into K
    b3_ref : (1, Cmid)         f32
    wh_ref : (Cmid, Chp)       bf16  fused [cls | reg | zero-pad] 1x1 weights
    bh_ref : (1, Chp)          f32
    out_ref: (th, W, Chp)      bf16  fused head output (lane-dense, 128 wide)
    """
    th, w_out, chp = out_ref.shape
    cin = x_ref.shape[-1]

    band = x_ref[...]                                     # (th+2, W+2, Cin)
    # On-chip im2col: nine shifted views of the halo band, folded into K.
    taps = [band[dy:dy + th, dx:dx + w_out, :].reshape(th * w_out, cin)
            for dy in range(3) for dx in range(3)]
    lhs = jnp.concatenate(taps, axis=-1)                  # (th*W, 9*Cin) bf16

    # 3x3 conv == a single K = 9*Cin GEMM; accumulate in f32 on the MXU.
    mid = jnp.dot(lhs, w3_ref[...], preferred_element_type=jnp.float32)
    mid = jnp.maximum(mid + b3_ref[...], 0.0)             # bias + ReLU in f32

    # Fused cls+reg 1x1 conv == one GEMM (output zero-padded to 128 lanes).
    out = jnp.dot(mid.astype(jnp.bfloat16), wh_ref[...],
                  preferred_element_type=jnp.float32) + bh_ref[...]
    out_ref[...] = out.reshape(th, w_out, chp).astype(out_ref.dtype)


def rpn_forward(x_nchw, params, *, th=8):
    """RPN forward.  x_nchw: (N, Cin, H, W).  Returns (cls, reg) in NCHW f32."""
    w3, b3, wh, bh = params["w3"], params["b3"], params["wh"], params["bh"]
    ccls, creg = params["ccls"], params["creg"]
    N, Cin, H, W = x_nchw.shape
    K, Cmid = w3.shape          # K = 9 * Cin
    Chp = wh.shape[1]           # fused head width, padded to multiple of 128

    # --- layout glue only (no FLOPs): NHWC + bf16 early + halo row bands ---
    th = min(th, H)
    nh = pl.cdiv(H, th)
    H_pad = nh * th
    x_nhwc = jnp.transpose(x_nchw, (0, 2, 3, 1)).astype(jnp.bfloat16)
    x_p = jnp.pad(x_nhwc, ((0, 0), (1, 1 + H_pad - H), (1, 1), (0, 0)))
    bands = jnp.stack([x_p[:, i * th:i * th + th + 2] for i in range(nh)],
                      axis=1)                    # (N, nh, th+2, W+2, Cin)

    m_total = N * nh * th * W
    cost = pl.CostEstimate(
        flops=2 * m_total * (K * Cmid + Cmid * Chp),
        transcendentals=0,
        bytes_accessed=(bands.size + w3.size + wh.size + m_total * Chp) * 2
                       + (b3.size + bh.size) * 4,
    )

    out = pl.pallas_call(
        rpn_kernel,
        out_shape=jax.ShapeDtypeStruct((N, nh, th, W, Chp), jnp.bfloat16),
        grid_spec=pltpu.PrefetchScalarGridSpec(
            num_scalar_prefetch=0,
            grid=(N, nh),
            in_specs=[
                pl.BlockSpec((None, None, th + 2, W + 2, Cin),
                             lambda n, i: (n, i, 0, 0, 0)),
                pl.BlockSpec((K, Cmid), lambda n, i: (0, 0)),
                pl.BlockSpec((1, Cmid), lambda n, i: (0, 0)),
                pl.BlockSpec((Cmid, Chp), lambda n, i: (0, 0)),
                pl.BlockSpec((1, Chp), lambda n, i: (0, 0)),
            ],
            out_specs=pl.BlockSpec((None, None, th, W, Chp),
                                   lambda n, i: (n, i, 0, 0, 0)),
        ),
        compiler_params=pltpu.CompilerParams(
            dimension_semantics=("parallel", "parallel")),
        cost_estimate=cost,
    )(bands, w3, b3, wh, bh)

    # --- glue: (N, nh, th, W, Chp) -> (N, H, W, Chp) -> split heads -> NCHW ---
    out = out.reshape(N, H_pad, W, Chp)[:, :H].astype(jnp.float32)
    cls = jnp.transpose(out[..., :ccls], (0, 3, 1, 2))
    reg = jnp.transpose(out[..., ccls:ccls + creg], (0, 3, 1, 2))
    return cls, reg


def init_params(key, in_channels, mid_channels, num_anchors):
    """Deterministic synthetic parameters (PyTorch Conv2d shapes, re-laid out)."""
    k3, kc, kr, kb3, kbc, kbr = jax.random.split(key, 6)
    ccls = num_anchors * 2
    creg = num_anchors * 4

    # torch initial_conv.weight: (Cmid, Cin, 3, 3)
    #   -> (kh, kw, Cin, Cmid) -> fold taps into rows: (9*Cin, Cmid)
    w3_t = 0.05 * jax.random.normal(k3, (mid_channels, in_channels, 3, 3),
                                    jnp.float32)
    w3 = jnp.transpose(w3_t, (2, 3, 1, 0)).reshape(9 * in_channels, mid_channels)
    b3 = 0.05 * jax.random.normal(kb3, (1, mid_channels), jnp.float32)

    # torch conv_cls.weight: (Ccls, Cmid, 1, 1) -> (Cmid, Ccls)
    wc_t = 0.05 * jax.random.normal(kc, (ccls, mid_channels, 1, 1), jnp.float32)
    wc = jnp.transpose(wc_t[:, :, 0, 0], (1, 0))
    bc = 0.05 * jax.random.normal(kbc, (1, ccls), jnp.float32)
    # torch conv_reg.weight: (Creg, Cmid, 1, 1) -> (Cmid, Creg)
    wr_t = 0.05 * jax.random.normal(kr, (creg, mid_channels, 1, 1), jnp.float32)
    wr = jnp.transpose(wr_t[:, :, 0, 0], (1, 0))
    br = 0.05 * jax.random.normal(kbr, (1, creg), jnp.float32)

    # Fuse heads: [cls | reg], zero-pad width to a multiple of 128 so the
    # kernel's output stores are full-width (unmasked) vst.
    chead = ccls + creg
    chead_pad = ((chead + 127) // 128) * 128
    wh = jnp.pad(jnp.concatenate([wc, wr], axis=1),
                 ((0, 0), (0, chead_pad - chead)))
    bh = jnp.pad(jnp.concatenate([bc, br], axis=1),
                 ((0, 0), (0, chead_pad - chead)))

    return dict(
        w3=w3.astype(jnp.bfloat16), b3=b3,
        wh=wh.astype(jnp.bfloat16), bh=bh,
        ccls=ccls, creg=creg,
    )


def _reference_forward(x_nchw, params):
    """Pure-JAX reference with matched bf16 rounding points (PyTorch semantics)."""
    N, Cin, H, W = x_nchw.shape
    x = jnp.transpose(x_nchw, (0, 2, 3, 1)).astype(jnp.bfloat16)
    x = x.astype(jnp.float32)
    xp = jnp.pad(x, ((0, 0), (1, 1), (1, 1), (0, 0)))
    w3 = params["w3"].astype(jnp.float32).reshape(3, 3, Cin, -1)
    acc = jnp.zeros((N, H, W, w3.shape[-1]), jnp.float32)
    for dy in range(3):
        for dx in range(3):
            acc = acc + jnp.einsum("nhwc,cd->nhwd",
                                   xp[:, dy:dy + H, dx:dx + W, :], w3[dy, dx])
    mid = jnp.maximum(acc + params["b3"][0], 0.0)
    mid = mid.astype(jnp.bfloat16).astype(jnp.float32)
    head = jnp.einsum("nhwc,cd->nhwd", mid,
                      params["wh"].astype(jnp.float32)) + params["bh"][0]
    ccls, creg = params["ccls"], params["creg"]
    cls = jnp.transpose(head[..., :ccls], (0, 3, 1, 2))
    reg = jnp.transpose(head[..., ccls:ccls + creg], (0, 3, 1, 2))
    return cls, reg


if __name__ == "__main__":
    # Small shapes consistent with the module: batch=2, Cin=32, H=W=16,
    # num_anchors=9 (cls=18 ch, reg=36 ch), hidden conv channels=256.
    N, Cin, H, W = 2, 32, 16, 16
    Cmid, num_anchors = 256, 9

    key = jax.random.PRNGKey(0)
    kx, kp = jax.random.split(key)
    x = jax.random.normal(kx, (N, Cin, H, W), jnp.float32)
    params = init_params(kp, Cin, Cmid, num_anchors)

    cls, reg = rpn_forward(x, params, th=8)
    cls = jax.block_until_ready(cls)
    reg = jax.block_until_ready(reg)

    assert cls.shape == (N, num_anchors * 2, H, W)
    assert reg.shape == (N, num_anchors * 4, H, W)

    # bf16 MXU inputs / bf16 output vs a bf16-rounded-input f32 reference:
    # only accumulation order + final bf16 rounding differ.
    cls_ref, reg_ref = _reference_forward(x, params)
    assert jnp.allclose(cls, cls_ref, atol=2e-2, rtol=2e-2)
    assert jnp.allclose(reg, reg_ref, atol=2e-2, rtol=2e-2)

    print("KERNEL_OK")
</pallas_src>

<mosaic_0001>
module attributes {stable_mosaic.version = 11 : i64} {
  func.func @rpn_kernel(%arg0: i32, %arg1: i32, %arg2: memref<1x1x10x18x32xbf16, #tpu.memory_space<vmem>>, %arg3: memref<288x256xbf16, #tpu.memory_space<vmem>>, %arg4: memref<1x256xf32, #tpu.memory_space<vmem>>, %arg5: memref<256x128xbf16, #tpu.memory_space<vmem>>, %arg6: memref<1x128xf32, #tpu.memory_space<vmem>>, %arg7: memref<1x1x8x16x128xbf16, #tpu.memory_space<vmem>>) attributes {dimension_semantics = [#tpu.dimension_semantics<parallel>, #tpu.dimension_semantics<parallel>], iteration_bounds = array<i64: 2, 2>, scalar_prefetch = 0 : i64, scratch_operands = 0 : i64, tpu.core_type = #tpu.core_type<tc>, window_params = [{transform_indices = @transform_0, window_bounds = array<i64: 1, 1, 10, 18, 32>}, {pipeline_mode = #tpu.pipeline_mode<synchronous>, transform_indices = @transform_1, window_bounds = array<i64: 288, 256>}, {pipeline_mode = #tpu.pipeline_mode<synchronous>, transform_indices = @transform_2, window_bounds = array<i64: 1, 256>}, {pipeline_mode = #tpu.pipeline_mode<synchronous>, transform_indices = @transform_3, window_bounds = array<i64: 256, 128>}, {pipeline_mode = #tpu.pipeline_mode<synchronous>, transform_indices = @transform_4, window_bounds = array<i64: 1, 128>}, {transform_indices = @transform_5, window_bounds = array<i64: 1, 1, 8, 16, 128>}]} {
    %c0 = arith.constant 0 : index
    %c0_0 = arith.constant 0 : index
    %c0_1 = arith.constant 0 : index
    %c0_2 = arith.constant 0 : index
    %c0_3 = arith.constant 0 : index
    %0 = vector.load %arg2[%c0, %c0_0, %c0_1, %c0_2, %c0_3] : memref<1x1x10x18x32xbf16, #tpu.memory_space<vmem>>, vector<1x1x10x18x32xbf16>
    %1 = vector.shape_cast %0 : vector<1x1x10x18x32xbf16> to vector<10x18x32xbf16>
    %2 = vector.extract_strided_slice %1 {offsets = [0, 0, 0], sizes = [8, 16, 32], strides = [1, 1, 1]} : vector<10x18x32xbf16> to vector<8x16x32xbf16>
    %3 = vector.shape_cast %2 : vector<8x16x32xbf16> to vector<128x32xbf16>
    %4 = vector.extract_strided_slice %1 {offsets = [0, 1, 0], sizes = [8, 16, 32], strides = [1, 1, 1]} : vector<10x18x32xbf16> to vector<8x16x32xbf16>
    %5 = vector.shape_cast %4 : vector<8x16x32xbf16> to vector<128x32xbf16>
    %6 = vector.extract_strided_slice %1 {offsets = [0, 2, 0], sizes = [8, 16, 32], strides = [1, 1, 1]} : vector<10x18x32xbf16> to vector<8x16x32xbf16>
    %7 = vector.shape_cast %6 : vector<8x16x32xbf16> to vector<128x32xbf16>
    %8 = vector.extract_strided_slice %1 {offsets = [1, 0, 0], sizes = [8, 16, 32], strides = [1, 1, 1]} : vector<10x18x32xbf16> to vector<8x16x32xbf16>
    %9 = vector.shape_cast %8 : vector<8x16x32xbf16> to vector<128x32xbf16>
    %10 = vector.extract_strided_slice %1 {offsets = [1, 1, 0], sizes = [8, 16, 32], strides = [1, 1, 1]} : vector<10x18x32xbf16> to vector<8x16x32xbf16>
    %11 = vector.shape_cast %10 : vector<8x16x32xbf16> to vector<128x32xbf16>
    %12 = vector.extract_strided_slice %1 {offsets = [1, 2, 0], sizes = [8, 16, 32], strides = [1, 1, 1]} : vector<10x18x32xbf16> to vector<8x16x32xbf16>
    %13 = vector.shape_cast %12 : vector<8x16x32xbf16> to vector<128x32xbf16>
    %14 = vector.extract_strided_slice %1 {offsets = [2, 0, 0], sizes = [8, 16, 32], strides = [1, 1, 1]} : vector<10x18x32xbf16> to vector<8x16x32xbf16>
    %15 = vector.shape_cast %14 : vector<8x16x32xbf16> to vector<128x32xbf16>
    %16 = vector.extract_strided_slice %1 {offsets = [2, 1, 0], sizes = [8, 16, 32], strides = [1, 1, 1]} : vector<10x18x32xbf16> to vector<8x16x32xbf16>
    %17 = vector.shape_cast %16 : vector<8x16x32xbf16> to vector<128x32xbf16>
    %18 = vector.extract_strided_slice %1 {offsets = [2, 2, 0], sizes = [8, 16, 32], strides = [1, 1, 1]} : vector<10x18x32xbf16> to vector<8x16x32xbf16>
    %19 = vector.shape_cast %18 : vector<8x16x32xbf16> to vector<128x32xbf16>
    %20 = tpu.concatenate %3, %5, %7, %9, %11, %13, %15, %17, %19 in 1 : vector<128x32xbf16>, vector<128x32xbf16>, vector<128x32xbf16>, vector<128x32xbf16>, vector<128x32xbf16>, vector<128x32xbf16>, vector<128x32xbf16>, vector<128x32xbf16>, vector<128x32xbf16> -> vector<128x288xbf16>
    %c0_4 = arith.constant 0 : index
    %c0_5 = arith.constant 0 : index
    %21 = vector.load %arg3[%c0_4, %c0_5] : memref<288x256xbf16, #tpu.memory_space<vmem>>, vector<288x256xbf16>
    %cst = arith.constant dense<0.000000e+00> : vector<128x256xf32>
    %22 = tpu.matmul %20, %21, %cst {dimension_numbers = #tpu.dot_dimension_numbers<[1], [0], [0], [1], [0, 0, 1, 1], [], []>} : vector<128x288xbf16>, vector<288x256xbf16>, vector<128x256xf32> -> vector<128x256xf32>
    %c0_6 = arith.constant 0 : index
    %c0_7 = arith.constant 0 : index
    %23 = vector.load %arg4[%c0_6, %c0_7] : memref<1x256xf32, #tpu.memory_space<vmem>>, vector<1x256xf32>
    %24 = vector.broadcast %23 : vector<1x256xf32> to vector<128x256xf32>
    %25 = arith.addf %22, %24 : vector<128x256xf32>
    %cst_8 = arith.constant 0.000000e+00 : f32
    %26 = vector.broadcast %cst_8 : f32 to vector<128x256xf32>
    %27 = arith.maximumf %25, %26 : vector<128x256xf32>
    %28 = arith.truncf %27 : vector<128x256xf32> to vector<128x256xbf16>
    %c0_9 = arith.constant 0 : index
    %c0_10 = arith.constant 0 : index
    %29 = vector.load %arg5[%c0_9, %c0_10] : memref<256x128xbf16, #tpu.memory_space<vmem>>, vector<256x128xbf16>
    %cst_11 = arith.constant dense<0.000000e+00> : vector<128x128xf32>
    %30 = tpu.matmul %28, %29, %cst_11 {dimension_numbers = #tpu.dot_dimension_numbers<[1], [0], [0], [1], [0, 0, 1, 1], [], []>} : vector<128x256xbf16>, vector<256x128xbf16>, vector<128x128xf32> -> vector<128x128xf32>
    %c0_12 = arith.constant 0 : index
    %c0_13 = arith.constant 0 : index
    %31 = vector.load %arg6[%c0_12, %c0_13] : memref<1x128xf32, #tpu.memory_space<vmem>>, vector<1x128xf32>
    %32 = vector.broadcast %31 : vector<1x128xf32> to vector<128x128xf32>
    %33 = arith.addf %30, %32 : vector<128x128xf32>
    %34 = vector.shape_cast %33 : vector<128x128xf32> to vector<8x16x128xf32>
    %35 = arith.truncf %34 : vector<8x16x128xf32> to vector<8x16x128xbf16>
    %c0_14 = arith.constant 0 : index
    %c0_15 = arith.constant 0 : index
    %c0_16 = arith.constant 0 : index
    %c0_17 = arith.constant 0 : index
    %c0_18 = arith.constant 0 : index
    %36 = vector.load %arg7[%c0_14, %c0_15, %c0_16, %c0_17, %c0_18] : memref<1x1x8x16x128xbf16, #tpu.memory_space<vmem>>, vector<1x1x8x16x128xbf16>
    %37 = vector.shape_cast %36 : vector<1x1x8x16x128xbf16> to vector<8x16x128xbf16>
    %38 = vector.shape_cast %35 : vector<8x16x128xbf16> to vector<1x1x8x16x128xbf16>
    tpu.vector_store %arg7[%c0_14, %c0_15, %c0_16, %c0_17, %c0_18], %38 {strides = array<i32>} : memref<1x1x8x16x128xbf16, #tpu.memory_space<vmem>>, vector<1x1x8x16x128xbf16>,
    return
  }
  func.func @transform_0(%arg0: i32, %arg1: i32) -> (i32, i32, i32, i32, i32) {
    %c0_i32 = arith.constant 0 : i32
    %c0_i32_0 = arith.constant 0 : i32
    %c0_i32_1 = arith.constant 0 : i32
    %c0_i32_2 = arith.constant 0 : i32
    return %arg0, %arg1, %c0_i32, %c0_i32_0, %c0_i32_1 : i32, i32, i32, i32, i32
  }
  func.func @transform_1(%arg0: i32, %arg1: i32) -> (i32, i32) {
    %c0_i32 = arith.constant 0 : i32
    %c0_i32_0 = arith.constant 0 : i32
    %c0_i32_1 = arith.constant 0 : i32
    return %c0_i32, %c0_i32_0 : i32, i32
  }
  func.func @transform_2(%arg0: i32, %arg1: i32) -> (i32, i32) {
    %c0_i32 = arith.constant 0 : i32
    %c0_i32_0 = arith.constant 0 : i32
    %c0_i32_1 = arith.constant 0 : i32
    return %c0_i32, %c0_i32_0 : i32, i32
  }
  func.func @transform_3(%arg0: i32, %arg1: i32) -> (i32, i32) {
    %c0_i32 = arith.constant 0 : i32
    %c0_i32_0 = arith.constant 0 : i32
    %c0_i32_1 = arith.constant 0 : i32
    return %c0_i32, %c0_i32_0 : i32, i32
  }
  func.func @transform_4(%arg0: i32, %arg1: i32) -> (i32, i32) {
    %c0_i32 = arith.constant 0 : i32
    %c0_i32_0 = arith.constant 0 : i32
    %c0_i32_1 = arith.constant 0 : i32
    return %c0_i32, %c0_i32_0 : i32, i32
  }
  func.func @transform_5(%arg0: i32, %arg1: i32) -> (i32, i32, i32, i32, i32) {
    %c0_i32 = arith.constant 0 : i32
    %c0_i32_0 = arith.constant 0 : i32
    %c0_i32_1 = arith.constant 0 : i32
    %c0_i32_2 = arith.constant 0 : i32
    return %arg0, %arg1, %c0_i32, %c0_i32_0, %c0_i32_1 : i32, i32, i32, i32, i32
  }
}

</mosaic_0001>

<bundles_post_ra>
// kernel: tpu_custom_call.1
= control target key start
LH: loop header
LB: loop body
LE: loop exit
PB: predicated region body
PF: predicated region fallthrough
CT: control target
= control target key end

     0   :  { %s3517_s0 = inlined_call_operand.vmem [shape: bf16[2,2,10,18,32], index: 0, kind: input, shape index: {}]   ;;  %s3518_s1 = inlined_call_operand.vmem [shape: bf16[288,256], index: 1, kind: input, shape index: {}]   ;;  %s3519_s2 = inlined_call_operand.vmem [shape: f32[1,256], index: 2, kind: input, shape index: {}]   ;;  %s3520_s3 = inlined_call_operand.vmem [shape: bf16[256,128], index: 3, kind: input, shape index: {}]   ;;  %s3521_s4 = inlined_call_operand.vmem [shape: f32[1,128], index: 4, kind: input, shape index: {}]   ;;  %s3522_s5 = inlined_call_operand.hbm [shape: bf16[2,2,8,16,128], index: 5, kind: output, shape index: {}]  }
   0x1   :  { %3530 = sst [smem:[#allocation6_spill]] %s3517_s0 }
   0x2   :  { %10 = vsyncpa [#allocation3], 0 }
   0x3   :  { %12 = vsyncpa [#allocation3 + $0x1], 0  ;;  %s2502_s18 = smov 0   ;;  %s2504_s19 = smov 0  }
   0x4   :  { %s2506_s20 = smov 0   ;;  %s2508_s21 = smov 0  }
   0x5   :  { %s2510_s22 = smov 0   ;;  %s2512_s23 = smov 0  }
   0x6   :  { %s2514_s24 = smov 0   ;;  %s2516_s25 = smov 0  }
   0x7 LB: > { %s1898_s26 = sadd.s32 4294967295, %s2466_s25   ;;  %s1899_s27 = sadd.s32 4294967294, %s2466_s25   ;;  %s2466_s25 = sphi %s2516_s25, %s18_s25   ;;  %s2462_s24 = sphi %s2514_s24, %s3549_s24   ;;  %s2458_s23 = sphi %s2512_s23, %s3548_s23   ;;  %s2454_s22 = sphi %s2510_s22, %s3547_s22   ;;  %s2450_s21 = sphi %s2508_s21, %s3546_s21   ;;  %s2446_s20 = sphi %s2506_s20, %s3545_s20   ;;  %s2442_s19 = sphi %s2504_s19, %s3544_s19   ;;  %s2438_s18 = sphi %s2502_s18, %s3543_s18  }
   0x8   : > { %s27_s28 = sadd.s32 1, %s2458_s23  ;;  %s30_s29 = sadd.s32 1, %s2462_s24 }
   0x9   : > { %p28_p0 = scmp.ge.s32.totalorder %s27_s28, 2  ;;  %p161_p1 = scmp.ne.s32.totalorder %s2446_s20, %s2442_s19 }
   0xa   : > { %p162_p2 = scmp.eq.s32.totalorder %s1898_s26, 3  ;;  %p167_p5 = scmp.ne.s32.totalorder %s2442_s19, %s2438_s18 }
   0xb   : > { %s3551_s28 = smov (%p28_p0, %s27_s28), 0  ;;  %s3553_s29 = smov (!%p28_p0, %s30_s29), %s2462_s24 }
   0xc   : > { %s147_s30 = ssub.s32 %s2458_s23, %s3551_s28  ;;  %p2553_p3 = por %p162_p2, %p161_p1 }
   0xd   : > { %p32_p4 = scmp.ge.s32.totalorder %s3553_s29, 2  ;;  %p168_p6 = scmp.eq.s32.totalorder %s1899_s27, 3 }
   0xe   : > { %p1902_p7 = scmp.ge.s32.totalorder %s2466_s25, 1  ;;  %p210_p9 = scmp.lt.s32.totalorder %s2466_s25, 5 }
   0xf   : > { %s3555_s29 = smov (%p32_p4, %s3553_s29), 0  ;;  %p2562_p8 = por %p168_p6, %p167_p5 }
  0x10   : > { %3532 = sst [smem:[#allocation5_spill]] %s3555_s29  ;;  %s146_s8 = ssub.s32 %s2462_s24, %s3555_s29 }
  0x11   : > { %s151_s9 = sadd.s32 1, %s2446_s20  ;;  %s148_s10 = sor.u32 %s147_s30, %s146_s8 }
  0x12   : > { %p211_p10 = pnand %p1902_p7, %p210_p9  ;;  %p149_p11 = scmp.eq.s32.totalorder %s148_s10, 0 }
  0x13   : > { %p242_p12 = scmp.lt.s32.totalorder (!%p211_p10), %s2454_s22, 1  ;;  %p244_p13 = scmp.lt.s32.totalorder (!%p211_p10), %s2450_s21, 1 }
  0x14   : > { %s2571_s11 = scalar_select %p149_p11, %s2446_s20, %s151_s9  }
  0x15   : > { %214 = sbr.rel (%p211_p10) target bundleno = 701 (0x2bd), region = 40  ;;  %s3534_s0 = sld [smem:[#allocation6_spill]] (!%p211_p10) }
  0x16   : > { %s3523_s8 = smov (!%p211_p10), 96   ;;  %s3525_s9 = smov (!%p211_p10), 32  }
  0x17   : > { %s3527_s10 = smov (!%p211_p10), 64  }
  0x1a   : > { %s243_s12 = scalar_select %p242_p12, %s2454_s22, 1  ;;  %vm501_vm0 = vcmask 1042432   ;;  %vm502_vm1 = vcmask 1046532   ;;  %vm282_vm2 = vsmask.f32 3328  ;;  %vm814_vm6 = vcmask 261120  }
  0x1b   : > { %s245_s13 = scalar_select %p244_p13, %s2450_s21, 1  ;;  %vm283_vm3 = vsmask.f32 7440  ;;  %vm2588_vm4 = vmor %vm501_vm0, %vm502_vm1  ;;  %vm839_vm7 = vcmask 523264   ;;  %vm856_vm8 = vcmask 785408  }
  0x1c   : > { %s2295_s14 = smul.u32 60, %s243_s12  ;;  %vm2610_vm5 = vmor %vm282_vm2, %vm283_vm3  ;;  %s3539_s12 = smov 32   ;;  %v2029_v8 = vld [vmem:[%s3518_s1 + $0x90] sm:$0xf] }
  0x1d   : > { %s2294_s15 = smul.u32 30, %s245_s13 }
  0x1f   : > { %s248_s16 = sadd.s32 %s2295_s14, %s2294_s15 }
  0x20   : > { %s1904_s17 = sshll.u32 %s248_s16, 2  ;;  %s239_s16 = sand.u32 1, %s2442_s19  }
  0x21   : > { %s2580_s30 = scalar_lea.vmem %s3534_s0, %s1904_s17  ;;  %s3540_s17 = smov 96  }
  0x22   : > { %v252_v0 = vld [vmem:[%s2580_s30] sm:$0xf]  ;;  %v253_v1 = vld [vmem:[%s2580_s30 + $0x4] sm:$0xf]  ;;  %v254_v2 = vld [vmem:[%s2580_s30 + $0x8] sm:$0x1] }
  0x23   : > { %v286_v3 = vshrl.u32 %v252_v0, 16  ;;  %v289_v4 = vshll.u32 %v252_v0, 16  ;;  %v295_v5 = vshll.u32 %v253_v1, 16  ;;  %v299_v6 = vshrl.u32 %v253_v1, 16  ;;  %v2586_v7 = vld [vmem:[%s2580_s30 + $0xc] sm:$0xff] }
  0x24   : > { %v305_v9 = vshll.u32 %v254_v2, 16  ;;  %v1905_v10 = vrot.slane %v252_v0, 9  ;;  %v506_v11 = vrot.slane %v253_v1, 5  ;;  %v509_v12 = vrot.slane %v254_v2, 5  ;;  %v2593_v13 = vld [vmem:[%s2580_s30 + $0xc] sm:$0xf]  ;;  %735 = vrot.lane.b32.xlu1 %v2586_v7, %s3523_s8 }
  0x25   : > { %v288_v14 = vrot.slane %v286_v3, 4  ;;  %v291_v15 = vrot.slane %v289_v4, 5  ;;  %v297_v16 = vrot.slane %v295_v5, 5  ;;  %v301_v17 = vrot.slane %v299_v6, 4  ;;  %v2598_v18 = vld [vmem:[%s2580_s30 + $0x10] sm:$0xf] }
  0x26   : > { %v307_v19 = vrot.slane %v305_v9, 5  ;;  %v507_v20 = vsel %vm2588_vm4, %v1905_v10, %v506_v11  ;;  %v508_v21 = vrot.slane %v506_v11, 4  ;;  %v310_v22 = vshrl.u32 %v2593_v13, 16  ;;  %v2604_v26 = vld [vmem:[%s2580_s30 + $0x14] sm:$0x1] }
  0x27   : > { %v292_v23 = vor.u32 %v291_v15, %v288_v14  ;;  %v302_v24 = vor.u32 %v301_v17, %v297_v16  ;;  %v692_v25 = vunpack.c.l.b16 %v507_v20  ;;  %v313_v27 = vshll.u32 %v2593_v13, 16  ;;  %v258_v28 = vld [vmem:[%s2580_s30 + $0x18] sm:$0xf]  ;;  %v259_v41 = vld [vmem:[%s2580_s30 + $0x1c] sm:$0xf] }
  0x28   : > { %v510_v30 = vsel %vm2588_vm4, %v508_v21, %v509_v12  ;;  %v312_v31 = vrot.slane %v310_v22, 4  ;;  %v319_v32 = vshll.u32 %v2598_v18, 16  ;;  %v323_v33 = vshrl.u32 %v2598_v18, 16  ;;  %v260_v47 = vld [vmem:[%s2580_s30 + $0x20] sm:$0x1] }
  0x29   : > { %v293_v34 = vrot.slane %v292_v23, 4  ;;  %v303_v35 = vrot.slane %v302_v24, 4  ;;  %v693_v36 = vunpack.c.l.b16 %v510_v30  ;;  %v315_v37 = vrot.slane %v313_v27, 5  ;;  %v261_v60 = vld [vmem:[%s2580_s30 + $0x24] sm:$0xf] }
  0x2a   : > { %v321_v38 = vrot.slane %v319_v32, 5  ;;  %v325_v39 = vrot.slane %v323_v33, 4  ;;  %v329_v40 = vshll.u32 %v2604_v26, 16  ;;  %v334_v42 = vshrl.u32 %v258_v28, 16  ;;  %v262_v1 = vld [vmem:[%s2580_s30 + $0x28] sm:$0xf] }
  0x2b   : > { %v298_v43 = vsel %vm2610_vm5, %v293_v34, %v297_v16  ;;  %v308_v44 = vsel %vm2610_vm5, %v303_v35, %v307_v19  ;;  %v708_v45 = vpack.c.b16 %v693_v36, %v692_v25  ;;  %v316_v46 = vor.u32 %v315_v37, %v312_v31  ;;  %v263_v24 = vld [vmem:[%s2580_s30 + $0x2c] sm:$0x1] }
  0x2c   : > { %v652_v48 = vunpack.c.l.b16 %v298_v43  ;;  %v653_v49 = vunpack.c.l.b16 %v308_v44  ;;  %v326_v50 = vor.u32 %v325_v39, %v321_v38  ;;  %v331_v51 = vrot.slane %v329_v40, 5 }
  0x2d   : > { %v317_v52 = vrot.slane %v316_v46, 4  ;;  %v336_v53 = vrot.slane %v334_v42, 4  ;;  %v337_v54 = vshll.u32 %v258_v28, 16  ;;  %v343_v55 = vshll.u32 %v259_v41, 16 }
  0x2e   : > { %v668_v56 = vpack.c.b16 %v653_v49, %v652_v48  ;;  %v327_v57 = vrot.slane %v326_v50, 4  ;;  %v347_v58 = vshrl.u32 %v259_v41, 16  ;;  %v353_v59 = vshll.u32 %v260_v47, 16  ;;  %v264_v50 = vld [vmem:[%s2580_s30 + $0x30] sm:$0xf] }
  0x2f   : > { %v322_v61 = vsel %vm2610_vm5, %v317_v52, %v321_v38  ;;  %v339_v62 = vrot.slane %v337_v54, 5  ;;  %v345_v63 = vrot.slane %v343_v55, 5  ;;  %v523_v0 = vrot.slane %v260_v47, 5 }
  0x30   : > { %676 = vrot.lane.b32.xlu0 %v668_v56, %s3525_s9  ;;  %v332_v2 = vsel %vm2610_vm5, %v327_v57, %v331_v51  ;;  %v654_v3 = vunpack.c.l.b16 %v322_v61  ;;  %v349_v4 = vrot.slane %v347_v58, 4  ;;  %v355_v5 = vrot.slane %v353_v59, 5  ;;  %v265_v58 = vld [vmem:[%s2580_s30 + $0x34] sm:$0xf] }
  0x31   : > { %v655_v6 = vunpack.c.l.b16 %v332_v2  ;;  %v340_v9 = vor.u32 %v339_v62, %v336_v53  ;;  %v1907_v10 = vrot.slane %v258_v28, 9  ;;  %v520_v11 = vrot.slane %v259_v41, 5 }
  0x32   : > { %v350_v12 = vor.u32 %v349_v4, %v345_v63  ;;  %v358_v14 = vshrl.u32 %v261_v60, 16  ;;  %v361_v15 = vshll.u32 %v261_v60, 16  ;;  %v367_v16 = vshll.u32 %v262_v1, 16 }
  0x33   : > { %v2632_v17 = vpack.c.b16 %v655_v6, %v654_v3  ;;  %v341_v19 = vrot.slane %v340_v9, 4  ;;  %v521_v20 = vsel %vm2588_vm4, %v1907_v10, %v520_v11  ;;  %v522_v21 = vrot.slane %v520_v11, 4  ;;  %v267_v11 = vld [vmem:[%s2580_s30 + $0x3c] sm:$0xf] }
  0x34   : > { %v351_v22 = vrot.slane %v350_v12, 4  ;;  %v696_v23 = vunpack.c.l.b16 %v521_v20  ;;  %v360_v25 = vrot.slane %v358_v14, 4  ;;  %v363_v27 = vrot.slane %v361_v15, 5 }
  0x35   : > { %678 = vrot.lane.b32.xlu1 %v2632_v17, %s3525_s9  ;;  %v346_v28 = vsel %vm2610_vm5, %v341_v19, %v345_v63  ;;  %v524_v30 = vsel %vm2588_vm4, %v522_v21, %v523_v0  ;;  %v369_v31 = vrot.slane %v367_v16, 5  ;;  %v371_v32 = vshrl.u32 %v262_v1, 16  ;;  %v266_v0 = vld [vmem:[%s2580_s30 + $0x38] sm:$0x1]  ;;  %v268_v19 = vld [vmem:[%s2580_s30 + $0x40] sm:$0xf] }
  0x36   : > { %v356_v33 = vsel %vm2610_vm5, %v351_v22, %v355_v5  ;;  %v656_v34 = vunpack.c.l.b16 %v346_v28  ;;  %v697_v35 = vunpack.c.l.b16 %v524_v30  ;;  %v364_v36 = vor.u32 %v363_v27, %v360_v25 }
  0x37   : > { %v657_v37 = vunpack.c.l.b16 %v356_v33  ;;  %v373_v38 = vrot.slane %v371_v32, 4  ;;  %v377_v39 = vshll.u32 %v263_v24, 16  ;;  %v530_v40 = vrot.slane %v263_v24, 5 }
  0x38   : > { %716 = vrot.lane.b32.xlu0 %v708_v45, %s3527_s10  ;;  %v2646_v41 = vpack.c.b16 %v697_v35, %v696_v23  ;;  %v365_v42 = vrot.slane %v364_v36, 4  ;;  %v1908_v43 = vrot.slane %v261_v60, 9  ;;  %v527_v44 = vrot.slane %v262_v1, 5  ;;  %v269_v36 = vld [vmem:[%s2580_s30 + $0x44] sm:$0x1] }
  0x39   : > { %v2648_v46 = vpack.c.b16 %v657_v37, %v656_v34  ;;  %v374_v47 = vor.u32 %v373_v38, %v369_v31  ;;  %v379_v48 = vrot.slane %v377_v39, 5  ;;  %v1906_v49 = vrot.slane %v2593_v13, 9 }
  0x3a   : > { %v370_v51 = vsel %vm2610_vm5, %v365_v42, %v369_v31  ;;  %v528_v52 = vsel %vm2588_vm4, %v1908_v43, %v527_v44  ;;  %v529_v45 = vrot.slane %v527_v44, 4  ;;  %v513_v53 = vrot.slane %v2598_v18, 5 }
  0x3b   : > { %v375_v54 = vrot.slane %v374_v47, 4  ;;  %v658_v55 = vunpack.c.l.b16 %v370_v51  ;;  %v698_v56 = vunpack.c.l.b16 %v528_v52  ;;  %v516_v57 = vrot.slane %v2604_v26, 5  ;;  %v2230_v51 = vld [vmem:[%s3518_s1 + $0x114] sm:$0xf0] }
  0x3c   : > { %v531_v13 = vsel %vm2588_vm4, %v529_v45, %v530_v40  ;;  %v514_v59 = vsel %vm2588_vm4, %v1906_v49, %v513_v53  ;;  %v515_v60 = vrot.slane %v513_v53, 4  ;;  %v382_v61 = vshrl.u32 %v264_v50, 16  ;;  %v2700_v53 = vld [vmem:[%s2580_s30 + $0x18] sm:$0xff] }
  0x3d   : > { %720 = vrot.lane.b32.xlu1 %v2646_v41, %s3527_s10  ;;  %v380_v18 = vsel %vm2610_vm5, %v375_v54, %v379_v48  ;;  %v699_v62 = vunpack.c.l.b16 %v531_v13  ;;  %v694_v63 = vunpack.c.l.b16 %v514_v59  ;;  %v385_v26 = vshll.u32 %v264_v50, 16 }
  0x3e   : > { %v659_v1 = vunpack.c.l.b16 %v380_v18  ;;  %v517_v2 = vsel %vm2588_vm4, %v515_v60, %v516_v57  ;;  %v384_v3 = vrot.slane %v382_v61, 4  ;;  %v391_v4 = vshll.u32 %v265_v58, 16 }
  0x3f   : > { %v2670_v5 = vpack.c.b16 %v699_v62, %v698_v56  ;;  %v695_v6 = vunpack.c.l.b16 %v517_v2  ;;  %v387_v9 = vrot.slane %v385_v26, 5  ;;  %v395_v10 = vshrl.u32 %v265_v58, 16  ;;  %v270_v56 = vld [vmem:[%s2580_s30 + $0x48] sm:$0xf] }
  0x40   : > { %680 = vrot.lane.b32.xlu0 %v2648_v46, %s3525_s9  ;;  %v2675_v12 = vpack.c.b16 %v659_v1, %v658_v55  ;;  %v393_v14 = vrot.slane %v391_v4, 5  ;;  %v401_v15 = vshll.u32 %v266_v0, 16  ;;  %v537_v16 = vrot.slane %v266_v0, 5 }
  0x41   : > { %v2678_v20 = vpack.c.b16 %v695_v6, %v694_v63  ;;  %v388_v21 = vor.u32 %v387_v9, %v384_v3  ;;  %v397_v22 = vrot.slane %v395_v10, 4  ;;  %v1909_v23 = vrot.slane %v264_v50, 9  ;;  %v2093_v50 = vld [vmem:[%s3518_s1 + $0x110] sm:$0xf]  ;;  %v271_v63 = vld [vmem:[%s2580_s30 + $0x4c] sm:$0xf] }
  0x42   : > { %v403_v24 = vrot.slane %v401_v15, 5  ;;  %v534_v25 = vrot.slane %v265_v58, 5  ;;  %v406_v27 = vshrl.u32 %v267_v11, 16  ;;  %v409_v28 = vshll.u32 %v267_v11, 16  ;;  %v272_v6 = vld [vmem:[%s2580_s30 + $0x50] sm:$0x1] }
  0x43   : > { %718 = vrot.lane.b32.xlu2 %v2678_v20, %s3527_s10  ;;  %v389_v30 = vrot.slane %v388_v21, 4  ;;  %v398_v31 = vor.u32 %v397_v22, %v393_v14  ;;  %v415_v32 = vshll.u32 %v268_v19, 16  ;;  %v419_v33 = vshrl.u32 %v268_v19, 16 }
  0x44   : > { %v535_v34 = vsel %vm2588_vm4, %v1909_v23, %v534_v25  ;;  %v536_v35 = vrot.slane %v534_v25, 4  ;;  %v408_v37 = vrot.slane %v406_v27, 4  ;;  %v411_v38 = vrot.slane %v409_v28, 5  ;;  %v2085_v23 = vld [vmem:[%s3518_s1 + $0x100] sm:$0xf] }
  0x45   : > { %722 = vrot.lane.b32.xlu1 %v2670_v5, %s3527_s10  ;;  %v394_v39 = vsel %vm2610_vm5, %v389_v30, %v393_v14  ;;  %v399_v40 = vrot.slane %v398_v31, 4  ;;  %v700_v42 = vunpack.c.l.b16 %v535_v34  ;;  %v417_v43 = vrot.slane %v415_v32, 5  ;;  %v273_v31 = vld [vmem:[%s2580_s30 + $0x54] sm:$0xf]  ;;  %v2731_v32 = vld [vmem:[%s2580_s30 + $0x24] sm:$0xff] }
  0x46   : > { %v660_v44 = vunpack.c.l.b16 %v394_v39  ;;  %v538_v47 = vsel %vm2588_vm4, %v536_v35, %v537_v16  ;;  %v412_v48 = vor.u32 %v411_v38, %v408_v37  ;;  %v421_v49 = vrot.slane %v419_v33, 4  ;;  %v274_v37 = vld [vmem:[%s2580_s30 + $0x58] sm:$0xf] }
  0x47   : > { %v404_v52 = vsel %vm2610_vm5, %v399_v40, %v403_v24  ;;  %v701_v45 = vunpack.c.l.b16 %v538_v47  ;;  %v425_v54 = vshll.u32 %v269_v36, 16  ;;  %v544_v55 = vrot.slane %v269_v36, 5  ;;  %v2228_v24 = vld [vmem:[%s3518_s1 + $0x104] sm:$0xf0] }
  0x48   : > { %682 = vrot.lane.b32.xlu0 %v2675_v12, %s3525_s9  ;;  %v661_v57 = vunpack.c.l.b16 %v404_v52  ;;  %v413_v58 = vrot.slane %v412_v48, 4  ;;  %v422_v13 = vor.u32 %v421_v49, %v417_v43  ;;  %v1910_v59 = vrot.slane %v267_v11, 9 }
  0x49   : > { %v2705_v60 = vpack.c.b16 %v701_v45, %v700_v42  ;;  %v427_v61 = vrot.slane %v425_v54, 5  ;;  %v541_v18 = vrot.slane %v268_v19, 5  ;;  %v2094_v62 = vor.u32 %v2230_v51, %v2093_v50  ;;  %v275_v50 = vld [vmem:[%s2580_s30 + $0x5c] sm:$0x1] }
  0x4a   : > { %v418_v0 = vsel %vm2610_vm5, %v413_v58, %v417_v43  ;;  %v423_v26 = vrot.slane %v422_v13, 4  ;;  %v430_v1 = vshrl.u32 %v270_v56, 16  ;;  %v2710_v2 = vpack.c.b16 %v661_v57, %v660_v44 }
  0x4b   : > { %737 = vrot.lane.b32.xlu2 %v2700_v53, %s3523_s8  ;;  %v542_v3 = vsel %vm2588_vm4, %v1910_v59, %v541_v18  ;;  %v543_v4 = vrot.slane %v541_v18, 4  ;;  %1295 = vmatpush.bf16.msra.mxu2 %v2094_v62  ;;  %v433_v9 = vshll.u32 %v270_v56, 16  ;;  %v439_v15 = vshll.u32 %v271_v63, 16 }
  0x4c   : > { %v428_v10 = vsel %vm2610_vm5, %v423_v26, %v427_v61  ;;  %v702_v11 = vunpack.c.l.b16 %v542_v3  ;;  %v432_v14 = vrot.slane %v430_v1, 4  ;;  %v662_v16 = vunpack.c.l.b16 %v418_v0  ;;  %v2756_v1 = vld [vmem:[%s2580_s30 + $0x30] sm:$0xff] }
  0x4d   : > { %724 = vrot.lane.b32.xlu1 %v2705_v60, %s3527_s10  ;;  %v545_v19 = vsel %vm2588_vm4, %v543_v4, %v544_v55  ;;  %v435_v21 = vrot.slane %v433_v9, 5  ;;  %v443_v22 = vshrl.u32 %v271_v63, 16  ;;  %v663_v25 = vunpack.c.l.b16 %v428_v10 }
  0x4e   : > { %v703_v27 = vunpack.c.l.b16 %v545_v19  ;;  %v441_v28 = vrot.slane %v439_v15, 5  ;;  %v449_v30 = vshll.u32 %v272_v6, 16  ;;  %v551_v35 = vrot.slane %v272_v6, 5 }
  0x4f   : > { %v436_v33 = vor.u32 %v435_v21, %v432_v14  ;;  %v445_v34 = vrot.slane %v443_v22, 4  ;;  %v1911_v36 = vrot.slane %v270_v56, 9  ;;  %v548_v40 = vrot.slane %v271_v63, 5 }
  0x50   : > { %684 = vrot.lane.b32.xlu0 %v2710_v2, %s3525_s9  ;;  %v2736_v38 = vpack.c.b16 %v703_v27, %v702_v11  ;;  %v451_v39 = vrot.slane %v449_v30, 5  ;;  %v2086_v42 = vor.u32 %v2228_v24, %v2085_v23  ;;  %v454_v47 = vshrl.u32 %v273_v31, 16 }
  0x51   : > { %v437_v43 = vrot.slane %v436_v33, 4  ;;  %v446_v44 = vor.u32 %v445_v34, %v441_v28  ;;  %v549_v48 = vsel %vm2588_vm4, %v1911_v36, %v548_v40  ;;  %v550_v49 = vrot.slane %v548_v40, 4  ;;  %v2013_v36 = vld [vmem:[%s3518_s1 + $0x70] sm:$0xf] }
  0x52   : > { %1296 = vmatpush.bf16.msra.mxu2 %v2086_v42  ;;  %v457_v51 = vshll.u32 %v273_v31, 16  ;;  %v463_v52 = vshll.u32 %v274_v37, 16  ;;  %v2741_v45 = vpack.c.b16 %v663_v25, %v662_v16  ;;  %v456_v56 = vrot.slane %v454_v47, 4  ;;  %v2208_v47 = vld [vmem:[%s3518_s1 + $0x64] sm:$0xf0] }
  0x53   : > { %739 = vrot.lane.b32.xlu2 %v2731_v32, %s3523_s8  ;;  %v442_v54 = vsel %vm2610_vm5, %v437_v43, %v441_v28  ;;  %v447_v55 = vrot.slane %v446_v44, 4  ;;  %v552_v57 = vsel %vm2588_vm4, %v550_v49, %v551_v35  ;;  %v704_v58 = vunpack.c.l.b16 %v549_v48  ;;  %v2015_v43 = vld [vmem:[%s3518_s1 + $0x78] sm:$0xf0]  ;;  %v2005_v44 = vld [vmem:[%s3518_s1 + $0x60] sm:$0xf] }
  0x54   : > { %v459_v13 = vrot.slane %v457_v51, 5  ;;  %v465_v59 = vrot.slane %v463_v52, 5  ;;  %v705_v18 = vunpack.c.l.b16 %v552_v57  ;;  %v467_v62 = vshrl.u32 %v274_v37, 16  ;;  %v2207_v49 = vld [vmem:[%s3518_s1 + $0x64] sm:$0xf]  ;;  %v2816_v52 = vld [vmem:[%s2580_s30 + $0x48] sm:$0xff] }
  0x55   : > { %726 = vrot.lane.b32.xlu1 %v2736_v38, %s3527_s10  ;;  %v452_v61 = vsel %vm2610_vm5, %v447_v55, %v451_v39  ;;  %2099 = vmatmul.msk.bf16.vlgmr.msra.gmra.mxu2 %vm814_vm6, %v2646_v41  ;;  %v473_v63 = vshll.u32 %v275_v50, 16  ;;  %v1912_v26 = vrot.slane %v273_v31, 9  ;;  %v558_v4 = vrot.slane %v275_v50, 5  ;;  %v2777_v31 = vld [vmem:[%s2580_s30 + $0x3c] sm:$0xff]  ;;  %v2209_v39 = vld [vmem:[%s3518_s1 + $0x74] sm:$0xf] }
  0x56   : > { %v460_v0 = vor.u32 %v459_v13, %v456_v56  ;;  %v469_v3 = vrot.slane %v467_v62, 4  ;;  %v555_v6 = vrot.slane %v274_v37, 5  ;;  %v664_v9 = vunpack.c.l.b16 %v442_v54  ;;  %v2210_v37 = vld [vmem:[%s3518_s1 + $0x74] sm:$0xf0]  ;;  %v2007_v50 = vld [vmem:[%s3518_s1 + $0x68] sm:$0xf0] }
  0x57   : > { %v665_v10 = vunpack.c.l.b16 %v452_v61  ;;  %v2760_v11 = vpack.c.b16 %v705_v18, %v704_v58  ;;  %v475_v16 = vrot.slane %v473_v63, 5  ;;  %v2014_v42 = vor.u32 %v2210_v37, %v2013_v36  ;;  %v1997_v55 = vld [vmem:[%s3518_s1 + $0x50] sm:$0xf]  ;;  %v2206_v56 = vld [vmem:[%s3518_s1 + $0x54] sm:$0xf0] }
  0x58   : > { %686 = vrot.lane.b32.xlu0 %v2741_v45, %s3525_s9  ;;  %v461_v14 = vrot.slane %v460_v0, 4  ;;  %v470_v15 = vor.u32 %v469_v3, %v465_v59  ;;  %v557_v19 = vrot.slane %v555_v6, 4  ;;  %v556_v21 = vsel %vm2588_vm4, %v1912_v26, %v555_v6  ;;  %v2205_v57 = vld [vmem:[%s3518_s1 + $0x54] sm:$0xf]  ;;  %v1999_v58 = vld [vmem:[%s3518_s1 + $0x58] sm:$0xf0] }
  0x59   : > { %v2768_v24 = vpack.c.b16 %v665_v10, %v664_v9  ;;  %v706_v28 = vunpack.c.l.b16 %v556_v21  ;;  %v2018_v48 = vor.u32 %v2209_v39, %v2015_v43  ;;  %1191 = vmatpush.bf16.msra.mxu0 %v2014_v42  ;;  %v2006_v51 = vor.u32 %v2208_v47, %v2005_v44  ;;  %v1989_v61 = vld [vmem:[%s3518_s1 + $0x40] sm:$0xf]  ;;  %v2204_v18 = vld [vmem:[%s3518_s1 + $0x44] sm:$0xf0]  ;;  %v2203_v62 = vld [vmem:[%s3518_s1 + $0x44] sm:$0xf] }
  0x5a   : > { %v471_v22 = vrot.slane %v470_v15, 4  ;;  %v559_v23 = vsel %vm2588_vm4, %v557_v19, %v558_v4  ;;  %v466_v25 = vsel %vm2610_vm5, %v461_v14, %v465_v59  ;;  %v2010_v54 = vor.u32 %v2207_v49, %v2007_v50  ;;  %v1991_v63 = vld [vmem:[%s3518_s1 + $0x48] sm:$0xf0]  ;;  %v2849_v26 = vld [vmem:[%s2580_s30 + $0x54] sm:$0xff]  ;;  %v1981_v4 = vld [vmem:[%s3518_s1 + $0x30] sm:$0xf] }
  0x5b   : > { %741 = vrot.lane.b32.xlu2 %v2756_v1, %s3523_s8  ;;  %v707_v30 = vunpack.c.l.b16 %v559_v23  ;;  %v666_v33 = vunpack.c.l.b16 %v466_v25  ;;  %1338 = vmatpush.bf16.msra.mxu3 %v2018_v48  ;;  %v1998_v13 = vor.u32 %v2206_v56, %v1997_v55  ;;  %v2002_v59 = vor.u32 %v2205_v57, %v1999_v58  ;;  %v2202_v6 = vld [vmem:[%s3518_s1 + $0x34] sm:$0xf0]  ;;  %v2201_v9 = vld [vmem:[%s3518_s1 + $0x34] sm:$0xf]  ;;  %v1983_v10 = vld [vmem:[%s3518_s1 + $0x38] sm:$0xf0] }
  0x5c   : > { %v476_v27 = vsel %vm2610_vm5, %v471_v22, %v475_v16  ;;  %v1990_v0 = vor.u32 %v2204_v18, %v1989_v61  ;;  %v1994_v3 = vor.u32 %v2203_v62, %v1991_v63  ;;  %v1982_v14 = vor.u32 %v2202_v6, %v1981_v4  ;;  %v2200_v16 = vld [vmem:[%s3518_s1 + $0x24] sm:$0xf0]  ;;  %v2199_v19 = vld [vmem:[%s3518_s1 + $0x24] sm:$0xf]  ;;  %v1975_v21 = vld [vmem:[%s3518_s1 + $0x28] sm:$0xf0] }
  0x5d   : > { %728 = vrot.lane.b32.xlu1 %v2760_v11, %s3527_s10  ;;  %v667_v34 = vunpack.c.l.b16 %v476_v27  ;;  %v2781_v35 = vpack.c.b16 %v707_v30, %v706_v28  ;;  %1192 = vmatpush.bf16.msra.mxu0 %v2006_v51  ;;  %v1986_v15 = vor.u32 %v2201_v9, %v1983_v10  ;;  %v2193_v23 = vld [vmem:[%s2580_s30 + $0x60] sm:$0xff]  ;;  %v1978_v25 = vor.u32 %v2199_v19, %v1975_v21  ;;  %v2225_v27 = vld [vmem:[%s3518_s1 + $0xf4] sm:$0xf]  ;;  %v2079_v28 = vld [vmem:[%s3518_s1 + $0xf8] sm:$0xf0] }
  0x5e   : > { %v1965_v30 = vld [vmem:[%s3518_s1 + $0x10] sm:$0xf]  ;;  %v2197_v36 = vld [vmem:[%s3518_s1 + $0x14] sm:$0xf]  ;;  %v1967_v37 = vld [vmem:[%s3518_s1 + $0x18] sm:$0xf0] }
  0x5f   : > { %v2794_v40 = vpack.c.b16 %v667_v34, %v666_v33  ;;  %1339 = vmatpush.bf16.msra.mxu3 %v2010_v54  ;;  %v2082_v33 = vor.u32 %v2225_v27, %v2079_v28  ;;  %v2198_v34 = vld [vmem:[%s3518_s1 + $0x14] sm:$0xf0]  ;;  %v1970_v42 = vor.u32 %v2197_v36, %v1967_v37  ;;  %v1957_v43 = vld [vmem:[%s3518_s1] sm:$0xf]  ;;  %v2196_v44 = vld [vmem:[%s3518_s1 + $0x4] sm:$0xf0] }
  0x60   : > { %688 = vrot.lane.b32.xlu0 %v2768_v24, %s3525_s9  ;;  %s3541_s9 = smov 64   ;;  %v1966_v39 = vor.u32 %v2198_v34, %v1965_v30  ;;  %v2195_v47 = vld [vmem:[%s3518_s1 + $0x4] sm:$0xf]  ;;  %v1959_v48 = vld [vmem:[%s3518_s1 + $0x8] sm:$0xf0]  ;;  %v1958_v49 = vor.u32 %v2196_v44, %v1957_v43 }
  0x61   : > { %1193 = vmatpush.bf16.msra.mxu0 %v1998_v13  ;;  %1387 = vmatpush.bf16.msrb.mxu2 %v2082_v33  ;;  %v1962_v50 = vor.u32 %v2195_v47, %v1959_v48  ;;  %v2229_v51 = vld [vmem:[%s3518_s1 + $0x114] sm:$0xf]  ;;  %v2095_v54 = vld [vmem:[%s3518_s1 + $0x118] sm:$0xf0]  ;;  %v2223_v56 = vld [vmem:[%s3518_s1 + $0xe4] sm:$0xf] }
  0x62   : > { %v2098_v55 = vor.u32 %v2229_v51, %v2095_v54  ;;  %v2071_v57 = vld [vmem:[%s3518_s1 + $0xe8] sm:$0xf0]  ;;  %v2958_v13 = vld [vmem:[%s2580_s30 + $0x64] sm:$0xf]  ;;  %v2965_v62 = vld [vmem:[%s2580_s30 + $0x60] sm:$0xf] }
  0x63   : > { %743 = vrot.lane.b32.xlu2 %v2777_v31, %s3523_s8  ;;  %1340 = vmatpush.bf16.msra.mxu3 %v2002_v59  ;;  %v2074_v58 = vor.u32 %v2223_v56, %v2071_v57  ;;  %v589_v18 = vrot.slane %v2958_v13, 5  ;;  %v2968_v63 = vld [vmem:[%s2580_s30 + $0x68] sm:$0x1]  ;;  %v2077_v19 = vld [vmem:[%s3518_s1 + $0xf0] sm:$0xf]  ;;  %s1903_s8 = sshll.u32 %s239_s16, 6 }
  0x64   : > { %v592_v4 = vrot.slane %v2968_v63, 5  ;;  %v2069_v33 = vld [vmem:[%s3518_s1 + $0xe0] sm:$0xf]  ;;  %v2224_v34 = vld [vmem:[%s3518_s1 + $0xe4] sm:$0xf0]  ;;  %s3445_s26 = scalar_lea.vmem [#allocation2], %s1903_s8 }
  0x65   : > { %730 = vrot.lane.b32.xlu1 %v2781_v35, %s3527_s10  ;;  %2100 = vmatmul.msk.bf16.gmra.mxu2 %vm814_vm6, %v2670_v5  ;;  %v2070_v36 = vor.u32 %v2224_v34, %v2069_v33  ;;  %v2061_v44 = vld [vmem:[%s3518_s1 + $0xd0] sm:$0xf]  ;;  %v2222_v47 = vld [vmem:[%s3518_s1 + $0xd4] sm:$0xf0]  ;;  %v2053_v54 = vld [vmem:[%s3518_s1 + $0xc0] sm:$0xf] }
  0x66   : > { %1194 = vmatpush.bf16.msra.mxu0 %v1990_v0  ;;  %1388 = vmatpush.bf16.msrb.mxu2 %v2074_v58  ;;  %v1913_v0 = vrot.slane %v2965_v62, 9  ;;  %v2219_v56 = vld [vmem:[%s3518_s1 + $0xc4] sm:$0xf]  ;;  %v2055_v58 = vld [vmem:[%s3518_s1 + $0xc8] sm:$0xf0] }
  0x67   : > { %1341 = vmatpush.bf16.msra.mxu3 %v1994_v3  ;;  %v591_v3 = vrot.slane %v589_v18, 4  ;;  %v2037_v33 = vld [vmem:[%s3518_s1 + $0xa0] sm:$0xf]  ;;  %v2216_v34 = vld [vmem:[%s3518_s1 + $0xa4] sm:$0xf0] }
  0x68   : > { %690 = vrot.lane.b32.xlu0 %v2794_v40, %s3539_s12  ;;  %v590_v6 = vsel %vm2588_vm4, %v1913_v0, %v589_v18  ;;  %v2058_v0 = vor.u32 %v2219_v56, %v2055_v58  ;;  %v2194_v58 = vld [vmem:[%s2580_s30 + $0x6c] sm:$0xff] }
  0x69   : > { %v593_v9 = vsel %vm2588_vm4, %v591_v3, %v592_v4  ;;  %v3041_v3 = vld [vmem:[%s2580_s30 + $0x6c] sm:$0xf]  ;;  %v3044_v4 = vld [vmem:[%s2580_s30 + $0x74] sm:$0x1] }
  0x6a   : > { %1195 = vmatpush.bf16.msra.mxu0 %v1982_v14  ;;  %v754_v14 = vunpack.c.l.b16 %v590_v6  ;;  %v2045_v6 = vld [vmem:[%s3518_s1 + $0xb0] sm:$0xf] }
  0x6b   : > { %745 = vrot.lane.b32.xlu2 %v2816_v52, %s3540_s17  ;;  %1342 = vmatpush.bf16.msra.mxu3 %v1986_v15  ;;  %v755_v15 = vunpack.c.l.b16 %v593_v9  ;;  %v2218_v9 = vld [vmem:[%s3518_s1 + $0xb4] sm:$0xf0] }
  0x6d   : > { %776 = vrot.lane.b32.xlu1 %v2700_v53, %s3527_s10  ;;  %v2997_v27 = vpack.c.b16 %v755_v15, %v754_v14  ;;  %v1914_v15 = vrot.slane %v3041_v3, 9 }
  0x6f   : > { %1343 = vmatpush.bf16.msra.mxu3 %v1978_v25  ;;  %v2185_v25 = vld [vmem:[%s2580_s30] sm:$0xff] }
  0x70   : > { %757 = vrot.lane.b32.xlu0 %v2678_v20, %s3539_s12  ;;  %v1973_v20 = vld [vmem:[%s3518_s1 + $0x20] sm:$0xf] }
  0x71   : > { %v1974_v22 = vor.u32 %v2200_v16, %v1973_v20  ;;  %v2221_v20 = vld [vmem:[%s3518_s1 + $0xd4] sm:$0xf]  ;;  %v2063_v16 = vld [vmem:[%s3518_s1 + $0xd8] sm:$0xf0] }
  0x73   : > { %747 = vrot.lane.b32.xlu2 %v2849_v26, %s3540_s17  ;;  %1196 = vmatpush.bf16.msra.mxu0 %v1974_v22  ;;  %v2066_v22 = vor.u32 %v2221_v20, %v2063_v16  ;;  %v626_v16 = vrot.slane %v3044_v4, 5 }
  0x74   : > { %1344 = vmatpush.bf16.msra.mxu3 %v1970_v42 }
  0x75   : > { %778 = vrot.lane.b32.xlu1 %v2731_v32, %s3527_s10  ;;  %2101 = vmatmul.msk.bf16.gmra.mxu2 %vm814_vm6, %v2705_v60 }
  0x76   : > { %1389 = vmatpush.bf16.msrb.mxu2 %v2066_v22  ;;  %v2047_v22 = vld [vmem:[%s3518_s1 + $0xb8] sm:$0xf0] }
  0x77   : > { %1197 = vmatpush.bf16.msra.mxu0 %v1966_v39 }
  0x78   : > { %759 = vrot.lane.b32.xlu0 %v2646_v41, %s3539_s12  ;;  %1345 = vmatpush.bf16.msra.mxu3 %v1962_v50  ;;  %v3021_v50 = vld [vmem:[%s2580_s30 + $0x70] sm:$0xf]  ;;  %s2181_s30 = sshll.u32 %s2454_s22, 5  ;;  %s1796_s22 = scalar_lea.sflag [#allocation3], %s239_s16 }
  0x7a   : > { %1390 = vmatpush.bf16.msrb.mxu2 %v2058_v0  ;;  %v564_v0 = vshll.u32 %v2965_v62, 16 }
  0x7b   : > { %749 = vrot.lane.b32.xlu2 %v2193_v23, %s3540_s17  ;;  %1198 = vmatpush.bf16.msra.mxu0 %v1958_v49  ;;  %v2062_v49 = vor.u32 %v2222_v47, %v2061_v44 }
  0x7d   : > { %780 = vrot.lane.b32.xlu1 %v2756_v1, %s3527_s10  ;;  %s1810_s10 = sshll.u32 %s3445_s26, 4  ;;  %s1811_s10 = int_to_ptr.vmem [resolvable:$true] %s1810_s10 }
  0x7f   : > { %1442 = vmatpush.bf16.msrb.mxu0 %v2098_v55  ;;  %v2220_v55 = vld [vmem:[%s3518_s1 + $0xc4] sm:$0xf0] }
  0x80   : > { %761 = vrot.lane.b32.xlu0 %v2670_v5, %s3539_s12  ;;  %v2054_v57 = vor.u32 %v2220_v55, %v2053_v54  ;;  %v2214_v54 = vld [vmem:[%s3518_s1 + $0x94] sm:$0xf0]  ;;  %v2213_v55 = vld [vmem:[%s3518_s1 + $0x94] sm:$0xf] }
  0x83   : > { %795 = vrot.lane.b32.xlu2 %v2648_v46, %s3540_s17 }
  0x85   : > { %2102 = vmatmul.msk.bf16.gmra.mxu2 %vm814_vm6, %v2736_v38  ;;  %782 = vrot.lane.b32.xlu1 %v2777_v31, %s3541_s9 }
  0x88   : > { %763 = vrot.lane.b32.xlu0 %v2705_v60, %s3539_s12 }
  0x8b   : > { %797 = vrot.lane.b32.xlu2 %v2675_v12, %s3540_s17 }
  0x8d   : > { %784 = vrot.lane.b32.xlu1 %v2816_v52, %s3541_s9 }
  0x90   : > { %765 = vrot.lane.b32.xlu0 %v2736_v38, %s3539_s12 }
  0x93   : > { %799 = vrot.lane.b32.xlu2 %v2710_v2, %s3540_s17 }
  0x95   : > { %2103 = vmatmul.msk.bf16.gmra.mxu2 %vm814_vm6, %v2760_v11  ;;  %786 = vrot.lane.b32.xlu1 %v2849_v26, %s3541_s9 }
  0x96   : > { %v736_v59 = vpop.permute.xlu1 %735 }
  0x98   : > { %767 = vrot.lane.b32.xlu0 %v2760_v11, %s3539_s12 }
  0x9b   : > { %801 = vrot.lane.b32.xlu2 %v2741_v45, %s3540_s17 }
  0x9d   : > { %v2960_v61 = vpop.permute.xlu2 %718  ;;  %788 = vrot.lane.b32.xlu1 %v2193_v23, %s3541_s9  ;;  %v2226_v23 = vld [vmem:[%s3518_s1 + $0xf4] sm:$0xf0] }
  0x9e   : > { %v2078_v28 = vor.u32 %v2226_v23, %v2077_v19  ;;  %v2046_v19 = vor.u32 %v2218_v9, %v2045_v6  ;;  %v570_v9 = vshll.u32 %v2958_v13, 16 }
  0xa0   : > { %769 = vrot.lane.b32.xlu0 %v2781_v35, %s3539_s12  ;;  %1240 = vmatpush.bf16.msra.mxu1 %v2078_v28 }
  0xa2   : > { %v677_v10 = vpop.permute.xlu0 %676 }
  0xa3   : > { %803 = vrot.lane.b32.xlu2 %v2768_v24, %s3540_s17  ;;  %v817_v37 = vsel %vm814_vm6, %v2185_v25, %v677_v10  ;;  %v2217_v10 = vld [vmem:[%s3518_s1 + $0xb4] sm:$0xf] }
  0xa4   : > { %1241 = vmatpush.bf16.msra.mxu1 %v2070_v36  ;;  %v2050_v25 = vor.u32 %v2217_v10, %v2047_v22  ;;  %v2215_v36 = vld [vmem:[%s3518_s1 + $0xa4] sm:$0xf]  ;;  %v574_v10 = vshrl.u32 %v2958_v13, 16  ;;  %v2021_v22 = vld [vmem:[%s3518_s1 + $0x80] sm:$0xf] }
  0xa5   : > { %v2989_v21 = vpop.permute.xlu2 %737  ;;  %2104 = vmatmul.msk.bf16.gmra.mxu2 %vm814_vm6, %v2781_v35  ;;  %790 = vrot.lane.b32.xlu1 %v2194_v58, %s3541_s9  ;;  %v2211_v13 = vld [vmem:[%s3518_s1 + $0x84] sm:$0xf] }
  0xa6   : > { %1391 = vmatpush.bf16.msrb.mxu2 %v2050_v25  ;;  %v2023_v25 = vld [vmem:[%s3518_s1 + $0x88] sm:$0xf0] }
  0xa7   : > { %v679_v30 = vpop.permute.xlu1 %678 }
  0xa8   : > { %771 = vrot.lane.b32.xlu0 %v2997_v27, %s3539_s12  ;;  %1242 = vmatpush.bf16.msra.mxu1 %v2062_v49  ;;  %v820_v23 = vsel %vm814_vm6, %v2586_v7, %v679_v30 }
  0xa9   : > { %v843_v7 = vsel %vm839_vm7, %v820_v23, %v2960_v61 }
  0xaa   : > { %v717_v39 = vpop.permute.xlu0 %716  ;;  %v861_v47 = vsel %vm856_vm8, %v843_v7, %v2989_v21  ;;  %v2030_v21 = vor.u32 %v2214_v54, %v2029_v8 }
  0xab   : > { %v841_v42 = vsel %vm839_vm7, %v817_v37, %v717_v39  ;;  %805 = vrot.lane.b32.xlu2 %v2794_v40, %s3540_s17  ;;  %v2038_v39 = vor.u32 %v2216_v34, %v2037_v33  ;;  %v572_v34 = vrot.slane %v570_v9, 5 }
  0xac   : > { %v858_v43 = vsel %vm856_vm8, %v841_v42, %v736_v59  ;;  %v623_v59 = vrot.slane %v3021_v50, 5  ;;  %1243 = vmatpush.bf16.msra.mxu1 %v2054_v57  ;;  %v2039_v42 = vld [vmem:[%s3518_s1 + $0xa8] sm:$0xf0]  ;;  %v2031_v57 = vld [vmem:[%s3518_s1 + $0x98] sm:$0xf0] }
  0xad   : > { %1199 = vmatmul.bf16.vlgmr.msra.gmra.mxu0 %v858_v43  ;;  %1346 = vmatmul.bf16.vlgmr.msra.gmra.mxu3 %v858_v43  ;;  %v3018_v48 = vpop.permute.xlu2 %739  ;;  %v2042_v44 = vor.u32 %v2215_v36, %v2039_v42  ;;  %v2034_v6 = vor.u32 %v2213_v55, %v2031_v57  ;;  %v576_v36 = vrot.slane %v574_v10, 4  ;;  %v604_v10 = vshll.u32 %v3021_v50, 16 }
  0xae   : > { %v625_v20 = vrot.slane %v623_v59, 4  ;;  %v624_v30 = vsel %vm2588_vm4, %v1914_v15, %v623_v59  ;;  %v561_v59 = vshrl.u32 %v2965_v62, 16  ;;  %v2212_v62 = vld [vmem:[%s3518_s1 + $0x84] sm:$0xf0] }
  0xaf   : > { %v3023_v51 = vpop.permute.xlu1 %720  ;;  %v811_v49 = vunpack.c.l.b16 %v624_v30  ;;  %1392 = vmatpush.bf16.msrb.mxu2 %v2042_v44  ;;  %v2022_v23 = vor.u32 %v2212_v62, %v2021_v22  ;;  %v2026_v30 = vor.u32 %v2211_v13, %v2023_v25  ;;  %v577_v42 = vor.u32 %v576_v36, %v572_v34 }
  0xb0   : > { %1244 = vmatpush.bf16.msra.mxu1 %v2046_v19  ;;  %v627_v37 = vsel %vm2588_vm4, %v625_v20, %v626_v16  ;;  %v563_v20 = vrot.slane %v561_v59, 4  ;;  %v566_v16 = vrot.slane %v564_v0, 5  ;;  %v2087_v59 = vld [vmem:[%s3518_s1 + $0x108] sm:$0xf0]  ;;  %v595_v0 = vshrl.u32 %v3041_v3, 16 }
  0xb1   : > { %v812_v61 = vunpack.c.l.b16 %v627_v37  ;;  %v580_v37 = vshll.u32 %v2968_v63, 16  ;;  %v578_v8 = vrot.slane %v577_v42, 4  ;;  %v606_v13 = vrot.slane %v604_v10, 5 }
  0xb2   : > { %v3038_v18 = vpop.permute.xlu0 %680  ;;  %v567_v33 = vor.u32 %v566_v16, %v563_v20  ;;  %v608_v20 = vshrl.u32 %v3021_v50, 16  ;;  %v597_v22 = vrot.slane %v595_v0, 4 }
  0xb3   : > { %v3112_v19 = vpack.c.b16 %v812_v61, %v811_v49  ;;  %1393 = vmatpush.bf16.msrb.mxu2 %v2034_v6  ;;  %v823_v44 = vsel %vm814_vm6, %v2700_v53, %v3038_v18  ;;  %v598_v6 = vshll.u32 %v3041_v3, 16 }
  0xb4   : > { %1245 = vmatpush.bf16.msra.mxu1 %v2038_v39  ;;  %v568_v39 = vrot.slane %v567_v33, 4  ;;  %v845_v63 = vsel %vm839_vm7, %v823_v44, %v3023_v51  ;;  %v2227_v51 = vld [vmem:[%s3518_s1 + $0x104] sm:$0xf]  ;;  %v614_v33 = vshll.u32 %v3044_v4, 16 }
  0xb5   : > { %v3055_v14 = vpop.permute.xlu2 %741  ;;  %2105 = vmatmul.msk.bf16.gmra.mxu2 %vm814_vm6, %v2997_v27  ;;  %v864_v57 = vsel %vm856_vm8, %v845_v63, %v3018_v48  ;;  %v2090_v9 = vor.u32 %v2227_v51, %v2087_v59  ;;  %v600_v62 = vrot.slane %v598_v6, 5 }
  0xb6   : > { %v573_v61 = vsel %vm2610_vm5, %v568_v39, %v572_v34 }
  0xb7   : > { %v3066_v28 = vpop.permute.xlu1 %722  ;;  %1394 = vmatpush.bf16.msrb.mxu2 %v2026_v30  ;;  %v751_v54 = vunpack.c.l.b16 %v573_v61  ;;  %1443 = vmatpush.bf16.msrb.mxu0 %v2090_v9  ;;  %v601_v25 = vor.u32 %v600_v62, %v597_v22  ;;  %v616_v30 = vrot.slane %v614_v33, 5 }
  0xb8   : > { %1246 = vmatpush.bf16.msra.mxu1 %v2030_v21 }
  0xb9   : > { %v602_v3 = vrot.slane %v601_v25, 4 }
  0xba   : > { %v3086_v43 = vpop.permute.xlu0 %682 }
  0xbb   : > { %v607_v50 = vsel %vm2610_vm5, %v602_v3, %v606_v13 }
  0xbc   : > { %1247 = vmatpush.bf16.msra.mxu1 %v2022_v23  ;;  %v610_v23 = vrot.slane %v608_v20, 4  ;;  %v792_v44 = vunpack.c.l.b16 %v607_v50 }
  0xbd   : > { %1204 = vmatmul.bf16.gmra.mxu0 %v861_v47  ;;  %1351 = vmatmul.bf16.gmra.mxu3 %v861_v47  ;;  %v3099_v56 = vpop.permute.xlu2 %743  ;;  %v582_v47 = vrot.slane %v580_v37, 5  ;;  %v826_v37 = vsel %vm814_vm6, %v2731_v32, %v3086_v43 }
  0xbe   : > { %v611_v36 = vor.u32 %v610_v23, %v606_v13 }
  0xbf   : > { %v3109_v15 = vpop.permute.xlu1 %724  ;;  %v583_v53 = vsel %vm2610_vm5, %v578_v8, %v582_v47  ;;  %v847_v47 = vsel %vm839_vm7, %v826_v37, %v3066_v28 }
  0xc0   : > { %v752_v18 = vunpack.c.l.b16 %v583_v53  ;;  %v612_v39 = vrot.slane %v611_v36, 4  ;;  %v867_v32 = vsel %vm856_vm8, %v847_v47, %v3055_v14 }
  0xc2   : > { %v3126_v7 = vpop.permute.xlu0 %684  ;;  %v3148_v58 = vpack.c.b16 %v752_v18, %v751_v54  ;;  %v617_v42 = vsel %vm2610_vm5, %v612_v39, %v616_v30 }
  0xc3   : > { %v793_v61 = vunpack.c.l.b16 %v617_v42  ;;  %v829_v18 = vsel %vm814_vm6, %v2756_v1, %v3126_v7 }
  0xc4   : > { %807 = vrot.lane.b32.xlu2 %v3148_v58, %s3540_s17  ;;  %v849_v14 = vsel %vm839_vm7, %v829_v18, %v3109_v15 }
  0xc5   : > { %v3132_v49 = vpop.permute.xlu2 %745  ;;  %2106 = vmatmul.msk.bf16.gmra.mxu2 %vm814_vm6, %v3112_v19  ;;  %v794_v54 = vpack.c.b16 %v793_v61, %v792_v44  ;;  %v870_v0 = vsel %vm856_vm8, %v849_v14, %v3099_v56 }
  0xc7   : > { %v3140_v55 = vpop.permute.xlu1 %726 }
  0xca   : > { %v3144_v21 = vpop.permute.xlu0 %686 }
  0xcb   : > { %v832_v15 = vsel %vm814_vm6, %v2777_v31, %v3144_v21 }
  0xcc   : > { %809 = vrot.lane.b32.xlu2 %v794_v54, %s3540_s17  ;;  %v851_v56 = vsel %vm839_vm7, %v832_v15, %v3140_v55  ;;  %s2180_s17 = sshll.u32 %s2450_s21, 4 }
  0xcd   : > { %1209 = vmatmul.bf16.gmra.mxu0 %v864_v57  ;;  %1356 = vmatmul.bf16.gmra.mxu3 %v864_v57  ;;  %v3160_v48 = vpop.permute.xlu2 %747  ;;  %s1807_s27 = sadd.s32 %s2181_s30, %s2180_s17  ;;  %s2392_s30 = scalar_lea.hbm %s3522_s5, 256 }
  0xce   : > { %s2182_s12 = sshll.u32 %s1807_s27, 2 }
  0xcf   : > { %v3164_v16 = vpop.permute.xlu1 %728  ;;  %s1809_s0 = scalar_lea.hbm %s3522_s5, %s2182_s12 }
  0xd0   : > { %s1812_s21 = sshll.u32 %s1809_s0, 4  ;;  %s1813_s21 = int_to_ptr.hbm [resolvable:$true] %s1812_s21 }
  0xd1   : > { %s2386_s29 = sshra.s32 %s1813_s21, 4  ;;  %s2387_s29 = int_to_ptr.hbm [resolvable:$true] %s2386_s29 }
  0xd2   : > { %v689_v34 = vpop.permute.xlu0 %688  ;;  %s2388_s15 = scalar_lea.hbm %s2387_s29, 64  ;;  %p2393_p4 = scmp.lt.s32.totalorder %s2387_s29, %s3522_s5 }
  0xd3   : > { %v835_v55 = vsel %vm814_vm6, %v2816_v52, %v689_v34  ;;  %p2389_p0 = scmp.ne.s32.totalorder %s2387_s29, %s2388_s15  ;;  %p2394_p5 = scmp.lt.s32.totalorder %s2392_s30, %s2388_s15 }
  0xd5   : > { %v3178_v8 = vpop.permute.xlu2 %749  ;;  %p2390_p1 = pnand %p2389_p0, %p2553_p3  ;;  %p2395_p6 = por %p2394_p5, %p2393_p4 }
  0xd7   : > { %v3176_v4 = vpop.permute.xlu1 %730  ;;  %p2391_p2 = pneg %p2390_p1 }
  0xd8   : > { %v3192_v59 = vpop.f32.mrf.mxu2 }
  0xd9   : > { %p2396_p7 = pnand %p2395_p6, %p2391_p2 }
  0xda   : > { %v691_v63 = vpop.permute.xlu0 %690 }
  0xdd   : > { %1214 = vmatmul.bf16.gmra.mxu0 %v867_v32  ;;  %1361 = vmatmul.bf16.gmra.mxu3 %v867_v32  ;;  %v796_v53 = vpop.permute.xlu2 %795 }
  0xdf   : > { %v777_v29 = vpop.permute.xlu1 %776 }
  0xe0   : > { %v3199_v10 = vpop.f32.mrf.mxu2 }
  0xe2   : > { %v758_v43 = vpop.permute.xlu0 %757 }
  0xe3   : > { %v883_v28 = vsel %vm814_vm6, %v2632_v17, %v758_v43 }
  0xe4   : > { %v906_v57 = vsel %vm839_vm7, %v883_v28, %v777_v29  ;;  %v2237_v28 = vld [vmem:[%s3520_s3 + $0x30] sm:$0xff] }
  0xe5   : > { %v922_v51 = vsel %vm856_vm8, %v906_v57, %v796_v53  ;;  %v798_v9 = vpop.permute.xlu2 %797 }
  0xe6   : > { %1248 = vmatmul.bf16.vlgmr.msra.gmra.mxu1 %v922_v51  ;;  %1395 = vmatmul.bf16.vlgmr.msrb.gmra.mxu2 %v922_v51 }
  0xe7   : > { %v779_v1 = vpop.permute.xlu1 %778 }
  0xe8   : > { %v3209_v62 = vpop.f32.mrf.mxu2 }
  0xea   : > { %v760_v6 = vpop.permute.xlu0 %759 }
  0xeb   : > { %v886_v17 = vsel %vm814_vm6, %v2648_v46, %v760_v6  ;;  %v873_v46 = vsel %vm856_vm8, %v851_v56, %v3132_v49  ;;  %v853_v49 = vsel %vm839_vm7, %v835_v55, %v3164_v16  ;;  %v838_v16 = vsel %vm814_vm6, %v2849_v26, %v691_v63 }
  0xec   : > { %v908_v7 = vsel %vm839_vm7, %v886_v17, %v779_v1  ;;  %v876_v36 = vsel %vm856_vm8, %v853_v49, %v3160_v48  ;;  %v855_v48 = vsel %vm839_vm7, %v838_v16, %v3176_v4  ;;  %v2238_v4 = vld [vmem:[%s3520_s3 + $0x38] sm:$0xff]  ;;  %v2236_v1 = vld [vmem:[%s3520_s3 + $0x28] sm:$0xff]  ;;  %v3323_v16 = vld [vmem:[%s3519_s2] sm:$0x3] }
  0xed   : > { %1219 = vmatmul.bf16.gmra.mxu0 %v870_v0  ;;  %1366 = vmatmul.bf16.gmra.mxu3 %v870_v0  ;;  %v925_v20 = vsel %vm856_vm8, %v908_v7, %v798_v9  ;;  %v800_v31 = vpop.permute.xlu2 %799  ;;  %v879_v42 = vsel %vm856_vm8, %v855_v48, %v3178_v8  ;;  %v2245_v8 = vld [vmem:[%s3520_s3 + $0x70] sm:$0xff] }
  0xee   : > { %1665 = vmatpush.bf16.msrb.mxu1 %v2238_v4 }
  0xef   : > { %v781_v23 = vpop.permute.xlu1 %780 }
  0xf0   : > { %v3217_v33 = vpop.f32.mrf.mxu2 }
  0xf2   : > { %v762_v22 = vpop.permute.xlu0 %761  ;;  %1666 = vmatpush.bf16.msrb.mxu1 %v2237_v28 }
  0xf3   : > { %v889_v13 = vsel %vm814_vm6, %v2675_v12, %v762_v22 }
  0xf4   : > { %v910_v25 = vsel %vm839_vm7, %v889_v13, %v781_v23 }
  0xf5   : > { %v928_v21 = vsel %vm856_vm8, %v910_v25, %v800_v31  ;;  %v802_v34 = vpop.permute.xlu2 %801  ;;  %v2243_v31 = vld [vmem:[%s3520_s3 + $0x60] sm:$0xff] }
  0xf6   : > { %1253 = vmatmul.bf16.gmra.mxu1 %v925_v20  ;;  %1400 = vmatmul.bf16.gmra.mxu2 %v925_v20  ;;  %v2235_v20 = vld [vmem:[%s3520_s3 + $0x20] sm:$0xff] }
  0xf7   : > { %v783_v30 = vpop.permute.xlu1 %782  ;;  %1667 = vmatpush.bf16.msrb.mxu1 %v2236_v1 }
  0xf8   : > { %v3225_v37 = vpop.f32.mrf.mxu2 }
  0xfa   : > { %v764_v12 = vpop.permute.xlu0 %763 }
  0xfb   : > { %v892_v3 = vsel %vm814_vm6, %v2710_v2, %v764_v12  ;;  %v2246_v2 = vld [vmem:[%s3520_s3 + $0x78] sm:$0xff]  ;;  %1668 = vmatpush.bf16.msrb.mxu1 %v2235_v20  ;;  %v2231_v12 = vld [vmem:[%s3520_s3] sm:$0xff] }
  0xfc   : > { %v912_v52 = vsel %vm839_vm7, %v892_v3, %v783_v30  ;;  %1714 = vmatpush.bf16.msrb.mxu3 %v2246_v2  ;;  %v3328_v2 = vperm.slane %v3323_v16, 0 }
  0xfd   : > { %1224 = vmatmul.bf16.gmra.mxu0 %v873_v46  ;;  %1371 = vmatmul.bf16.gmra.mxu3 %v873_v46  ;;  %v931_v39 = vsel %vm856_vm8, %v912_v52, %v802_v34  ;;  %v804_v54 = vpop.permute.xlu2 %803 }
  0xff   : > { %v785_v47 = vpop.permute.xlu1 %784 }
 0x100   : > { %v3236_v50 = vpop.f32.mrf.mxu2  ;;  %1715 = vmatpush.bf16.msrb.mxu3 %v2245_v8 }
 0x102   : > { %v766_v44 = vpop.permute.xlu0 %765 }
 0x103   : > { %v895_v26 = vsel %vm814_vm6, %v2741_v45, %v766_v44 }
 0x104   : > { %v914_v61 = vsel %vm839_vm7, %v895_v26, %v785_v47 }
 0x105   : > { %v934_v63 = vsel %vm856_vm8, %v914_v61, %v804_v54  ;;  %v806_v51 = vpop.permute.xlu2 %805  ;;  %v2241_v54 = vld [vmem:[%s3520_s3 + $0x50] sm:$0xff] }
 0x106   : > { %1258 = vmatmul.bf16.gmra.mxu1 %v928_v21  ;;  %1405 = vmatmul.bf16.gmra.mxu2 %v928_v21  ;;  %v2232_v21 = vld [vmem:[%s3520_s3 + $0x8] sm:$0xff] }
 0x107   : > { %v787_v53 = vpop.permute.xlu1 %786 }
 0x108   : > { %v3247_v32 = vpop.f32.mrf.mxu2 }
 0x10a   : > { %v768_v29 = vpop.permute.xlu0 %767 }
 0x10b   : > { %v898_v43 = vsel %vm814_vm6, %v2768_v24, %v768_v29  ;;  %v2244_v24 = vld [vmem:[%s3520_s3 + $0x68] sm:$0xff] }
 0x10c   : > { %v916_v57 = vsel %vm839_vm7, %v898_v43, %v787_v53  ;;  %1716 = vmatpush.bf16.msrb.mxu3 %v2244_v24 }
 0x10d   : > { %1229 = vmatmul.bf16.gmra.mxu0 %v876_v36  ;;  %1376 = vmatmul.bf16.gmra.mxu3 %v876_v36  ;;  %v937_v0 = vsel %vm856_vm8, %v916_v57, %v806_v51 }
 0x10f   : > { %v789_v9 = vpop.permute.xlu1 %788 }
 0x110   : > { %v3261_v18 = vpop.f32.mrf.mxu2  ;;  %1717 = vmatpush.bf16.msrb.mxu3 %v2243_v31 }
 0x112   : > { %v770_v17 = vpop.permute.xlu0 %769 }
 0x113   : > { %v901_v7 = vsel %vm814_vm6, %v2794_v40, %v770_v17  ;;  %v2233_v40 = vld [vmem:[%s3520_s3 + $0x10] sm:$0xff] }
 0x114   : > { %v918_v15 = vsel %vm839_vm7, %v901_v7, %v789_v9 }
 0x116   : > { %1263 = vmatmul.bf16.gmra.mxu1 %v931_v39  ;;  %1410 = vmatmul.bf16.gmra.mxu2 %v931_v39 }
 0x117   : > { %v791_v36 = vpop.permute.xlu1 %790 }
 0x11a   : > { %v772_v25 = vpop.permute.xlu0 %771 }
 0x11b   : > { %v904_v49 = vsel %vm814_vm6, %v3148_v58, %v772_v25  ;;  %v2242_v58 = vld [vmem:[%s3520_s3 + $0x58] sm:$0xff] }
 0x11c   : > { %v920_v3 = vsel %vm839_vm7, %v904_v49, %v791_v36  ;;  %1718 = vmatpush.bf16.msrb.mxu3 %v2242_v58 }
 0x11d   : > { %1234 = vmatmul.bf16.gmra.mxu0 %v879_v42  ;;  %1381 = vmatmul.bf16.gmra.mxu3 %v879_v42 }
 0x11e   : > { %v808_v56 = vpop.permute.xlu2 %807 }
 0x11f   : > { %v940_v13 = vsel %vm856_vm8, %v918_v15, %v808_v56 }
 0x120   : > { %1719 = vmatpush.bf16.msrb.mxu3 %v2241_v54 }
 0x126   : > { %1268 = vmatmul.bf16.gmra.mxu1 %v934_v63  ;;  %1415 = vmatmul.bf16.gmra.mxu2 %v934_v63  ;;  %v810_v30 = vpop.permute.xlu2 %809 }
 0x127   : > { %v943_v34 = vsel %vm856_vm8, %v920_v3, %v810_v30 }
 0x12a   : > { %v3252_v45 = vpop.f32.mrf.mxu0 }
 0x12b   : > { %v1201_v26 = vadd.f32 %v3252_v45, %v3328_v2 }
 0x12d   : > { %2107 = vmatmul.msk.bf16.vlgmr.msrb.gmra.mxu0 %vm814_vm6, %v2646_v41  ;;  %v3265_v41 = vpop.f32.mrf.mxu2 }
 0x132   : > { %v1202_v14 = vpop.f32.mrf.mxu0 }
 0x133   : > { %v1203_v4 = vadd.f32 %v1202_v14, %v3328_v2 }
 0x135   : > { %v3283_v46 = vpop.f32.mrf.mxu2 }
 0x136   : > { %1273 = vmatmul.bf16.gmra.mxu1 %v937_v0  ;;  %1420 = vmatmul.bf16.gmra.mxu2 %v937_v0 }
 0x13a   : > { %v3270_v6 = vpop.f32.mrf.mxu0 }
 0x13b   : > { %v1206_v0 = vadd.f32 %v3270_v6, %v3328_v2 }
 0x13d   : > { %2108 = vmatmul.msk.bf16.gmra.mxu0 %vm814_vm6, %v2670_v5  ;;  %v2234_v5 = vld [vmem:[%s3520_s3 + $0x18] sm:$0xff]  ;;  %v3300_v55 = vpop.f32.mrf.mxu2 }
 0x13e   : > { %1669 = vmatpush.bf16.msrb.mxu1 %v2234_v5  ;;  %v1347_v5 = vpop.f32.mrf.mxu3 }
 0x142   : > { %v1207_v22 = vpop.f32.mrf.mxu0  ;;  %1670 = vmatpush.bf16.msrb.mxu1 %v2233_v40 }
 0x143   : > { %v1208_v24 = vadd.f32 %v1207_v22, %v3328_v2 }
 0x145   : > { %v3311_v39 = vpop.f32.mrf.mxu2 }
 0x146   : > { %1278 = vmatmul.bf16.gmra.mxu1 %v940_v13  ;;  %1425 = vmatmul.bf16.gmra.mxu2 %v940_v13 }
 0x147   : > { %1671 = vmatpush.bf16.msrb.mxu1 %v2232_v21 }
 0x14a   : > { %v3292_v23 = vpop.f32.mrf.mxu0 }
 0x14b   : > { %1672 = vmatpush.bf16.msrb.mxu1 %v2231_v12  ;;  %v1349_v12 = vpop.f32.mrf.mxu3 }
 0x14d   : > { %2109 = vmatmul.msk.bf16.gmra.mxu0 %vm814_vm6, %v2705_v60  ;;  %v3325_v48 = vpop.f32.mrf.mxu2 }
 0x152   : > { %v1212_v52 = vpop.f32.mrf.mxu0 }
 0x153   : > { %v1213_v31 = vadd.f32 %v1212_v52, %v3328_v2 }
 0x156   : > { %1283 = vmatmul.bf16.gmra.mxu1 %v943_v34  ;;  %1430 = vmatmul.bf16.gmra.mxu2 %v943_v34 }
 0x15a   : > { %v3313_v60 = vpop.f32.mrf.mxu0 }
 0x15d   : > { %2110 = vmatmul.msk.bf16.gmra.mxu0 %vm814_vm6, %v2736_v38  ;;  %v3335_v38 = vpop.f32.mrf.mxu2 }
 0x162   : > { %v3330_v42 = vpop.f32.mrf.mxu0 }
 0x163   : > { %v1249_v44 = vpop.f32.mrf.mxu1 }
 0x164   : > { %v1250_v47 = vadd.f32 %v1249_v44, %v1201_v26  ;;  %v1216_v26 = vadd.f32 %v3313_v60, %v3328_v2 }
 0x165   : > { %v3348_v14 = vpop.f32.mrf.mxu2 }
 0x166   : > { %v1299_v8 = vadd.f32 %v3192_v59, %v1250_v47  ;;  %v1352_v47 = vpop.f32.mrf.mxu3 }
 0x168   : > { %v1485_v43 = vmax.f32 %v1299_v8, 0.0 }
 0x16a   : > { %v3337_v61 = vpop.f32.mrf.mxu0 }
 0x16b   : > { %v1251_v63 = vpop.f32.mrf.mxu1 }
 0x16c   : > { %v1252_v29 = vadd.f32 %v1251_v63, %v1203_v4  ;;  %v1218_v4 = vadd.f32 %v3330_v42, %v3328_v2  ;;  %v1221_v42 = vadd.f32 %v3337_v61, %v3328_v2 }
 0x16d   : > { %2111 = vmatmul.msk.bf16.gmra.mxu0 %vm814_vm6, %v2760_v11  ;;  %v2240_v11 = vld [vmem:[%s3520_s3 + $0x48] sm:$0xff]  ;;  %v3361_v9 = vpop.f32.mrf.mxu2 }
 0x16e   : > { %v1301_v45 = vadd.f32 %v3199_v10, %v1252_v29  ;;  %1720 = vmatpush.bf16.msrb.mxu3 %v2240_v11 }
 0x170   : > { %v1487_v53 = vmax.f32 %v1301_v45, 0.0 }
 0x172   : > { %v3346_v28 = vpop.f32.mrf.mxu0  ;;  %v1517_v57 = vpack.c.bf16 %v1487_v53, %v1485_v43 }
 0x173   : > { %v1254_v51 = vpop.f32.mrf.mxu1 }
 0x174   : > { %1673 = vmatmul.bf16.vlgmr.msrb.gmra.mxu1 %v1517_v57  ;;  %v1255_v59 = vadd.f32 %v1254_v51, %v1206_v0  ;;  %v1354_v51 = vpop.f32.mrf.mxu3 }
 0x175   : > { %v1396_v40 = vpop.f32.mrf.mxu2 }
 0x176   : > { %v1304_v1 = vadd.f32 %v3209_v62, %v1255_v59  ;;  %v1211_v62 = vadd.f32 %v3292_v23, %v3328_v2 }
 0x178   : > { %v1489_v20 = vmax.f32 %v1304_v1, 0.0 }
 0x17a   : > { %v3353_v17 = vpop.f32.mrf.mxu0 }
 0x17b   : > { %v1256_v10 = vpop.f32.mrf.mxu1 }
 0x17c   : > { %v1257_v7 = vadd.f32 %v1256_v10, %v1208_v24 }
 0x17d   : > { %2112 = vmatmul.msk.bf16.gmra.mxu0 %vm814_vm6, %v2781_v35  ;;  %v1398_v52 = vpop.f32.mrf.mxu2 }
 0x17e   : > { %v1306_v6 = vadd.f32 %v3217_v33, %v1257_v7  ;;  %v2239_v33 = vld [vmem:[%s3520_s3 + $0x40] sm:$0xff]  ;;  %v1357_v7 = vpop.f32.mrf.mxu3 }
 0x17f   : > { %1721 = vmatpush.bf16.msrb.mxu3 %v2239_v33 }
 0x180   : > { %v1491_v15 = vmax.f32 %v1306_v6, 0.0 }
 0x182   : > { %v3364_v56 = vpop.f32.mrf.mxu0  ;;  %v1519_v22 = vpack.c.bf16 %v1491_v15, %v1489_v20 }
 0x183   : > { %v1259_v13 = vpop.f32.mrf.mxu1 }
 0x184   : > { %1678 = vmatmul.bf16.gmra.mxu1 %v1519_v22  ;;  %v1260_v25 = vadd.f32 %v1259_v13, %v1211_v62 }
 0x185   : > { %v1401_v54 = vpop.f32.mrf.mxu2 }
 0x186   : > { %v1309_v49 = vadd.f32 %v3225_v37, %v1260_v25 }
 0x188   : > { %v1493_v3 = vmax.f32 %v1309_v49, 0.0 }
 0x18a   : > { %v3369_v35 = vpop.f32.mrf.mxu0 }
 0x18b   : > { %v1261_v21 = vpop.f32.mrf.mxu1 }
 0x18c   : > { %v1262_v36 = vadd.f32 %v1261_v21, %v1213_v31 }
 0x18d   : > { %2113 = vmatmul.msk.bf16.gmra.mxu0 %vm814_vm6, %v2997_v27  ;;  %v1403_v0 = vpop.f32.mrf.mxu2 }
 0x18e   : > { %v1311_v23 = vadd.f32 %v3236_v50, %v1262_v36 }
 0x190   : > { %v1495_v30 = vmax.f32 %v1311_v23, 0.0 }
 0x192   : > { %v3378_v34 = vpop.f32.mrf.mxu0  ;;  %v1521_v58 = vpack.c.bf16 %v1495_v30, %v1493_v3 }
 0x193   : > { %v1264_v44 = vpop.f32.mrf.mxu1 }
 0x194   : > { %1683 = vmatmul.bf16.gmra.mxu1 %v1521_v58  ;;  %v1265_v37 = vadd.f32 %v1264_v44, %v1216_v26 }
 0x195   : > { %v1406_v15 = vpop.f32.mrf.mxu2 }
 0x196   : > { %v1314_v63 = vadd.f32 %v3247_v32, %v1265_v37  ;;  %v3395_v32 = vperm.slane %v3323_v16, 1 }
 0x198   : > { %v1497_v45 = vmax.f32 %v1314_v63, 0.0  ;;  %v1348_v1 = vadd.f32 %v1347_v5, %v3395_v32  ;;  %v1350_v61 = vadd.f32 %v1349_v12, %v3395_v32  ;;  %v1226_v5 = vadd.f32 %v3353_v17, %v3328_v2 }
 0x199   : > { %v1353_v58 = vadd.f32 %v1352_v47, %v3395_v32  ;;  %v1355_v26 = vadd.f32 %v1354_v51, %v3395_v32  ;;  %v1231_v47 = vadd.f32 %v3369_v35, %v3328_v2 }
 0x19a   : > { %v3384_v27 = vpop.f32.mrf.mxu0  ;;  %v1397_v20 = vadd.f32 %v1396_v40, %v1348_v1  ;;  %v1399_v13 = vadd.f32 %v1398_v52, %v1350_v61  ;;  %v1228_v40 = vadd.f32 %v3364_v56, %v3328_v2 }
 0x19b   : > { %v1266_v50 = vpop.f32.mrf.mxu1  ;;  %v1402_v17 = vadd.f32 %v1401_v54, %v1353_v58  ;;  %v1233_v54 = vadd.f32 %v3378_v34, %v3328_v2 }
 0x19c   : > { %v1267_v8 = vadd.f32 %v1266_v50, %v1218_v4  ;;  %v1404_v50 = vadd.f32 %v1403_v0, %v1355_v26 }
 0x19d   : > { %2114 = vmatmul.msk.bf16.gmra.mxu0 %vm814_vm6, %v3112_v19  ;;  %v1223_v19 = vadd.f32 %v3346_v28, %v3328_v2  ;;  %v1408_v23 = vpop.f32.mrf.mxu2 }
 0x19e   : > { %v1316_v29 = vadd.f32 %v3261_v18, %v1267_v8 }
 0x1a0   : > { %v1499_v43 = vmax.f32 %v1316_v29, 0.0 }
 0x1a2   : > { %v3390_v60 = vpop.f32.mrf.mxu0  ;;  %v1523_v53 = vpack.c.bf16 %v1499_v43, %v1497_v45 }
 0x1a3   : > { %v1269_v57 = vpop.f32.mrf.mxu1 }
 0x1a4   : > { %1688 = vmatmul.bf16.gmra.mxu1 %v1523_v53  ;;  %v1270_v59 = vadd.f32 %v1269_v57, %v1221_v42 }
 0x1a5   : > { %v1411_v53 = vpop.f32.mrf.mxu2 }
 0x1a6   : > { %v1319_v11 = vadd.f32 %v3265_v41, %v1270_v59 }
 0x1a8   : > { %v1501_v22 = vmax.f32 %v1319_v11, 0.0 }
 0x1aa   : > { %v1445_v18 = vpop.f32.mrf.mxu0 }
 0x1ab   : > { %v1271_v24 = vpop.f32.mrf.mxu1  ;;  %v1446_v62 = vadd.f32 %v1445_v18, %v1397_v20 }
 0x1ac   : > { %v1272_v10 = vadd.f32 %v1271_v24, %v1223_v19  ;;  %v1358_v24 = vadd.f32 %v1357_v7, %v3395_v32  ;;  %v1236_v7 = vadd.f32 %v3384_v27, %v3328_v2 }
 0x1ad   : > { %v1486_v41 = vmax.f32 %v1446_v62, 0.0  ;;  %v1413_v11 = vpop.f32.mrf.mxu2 }
 0x1ae   : > { %v1321_v6 = vadd.f32 %v3283_v46, %v1272_v10  ;;  %v1359_v46 = vpop.f32.mrf.mxu3  ;;  %v1407_v35 = vadd.f32 %v1406_v15, %v1358_v24  ;;  %v1238_v15 = vadd.f32 %v3390_v60, %v3328_v2 }
 0x1af   : > { %v1360_v1 = vadd.f32 %v1359_v46, %v3395_v32 }
 0x1b0   : > { %v1503_v16 = vmax.f32 %v1321_v6, 0.0 }
 0x1b1   : > { %v1409_v20 = vadd.f32 %v1408_v23, %v1360_v1 }
 0x1b2   : > { %v1447_v25 = vpop.f32.mrf.mxu0  ;;  %v1525_v28 = vpack.c.bf16 %v1503_v16, %v1501_v22 }
 0x1b3   : > { %v1448_v31 = vadd.f32 %v1447_v25, %v1399_v13  ;;  %v1274_v33 = vpop.f32.mrf.mxu1 }
 0x1b4   : > { %1693 = vmatmul.bf16.gmra.mxu1 %v1525_v28  ;;  %v1275_v36 = vadd.f32 %v1274_v33, %v1226_v5 }
 0x1b5   : > { %v1488_v21 = vmax.f32 %v1448_v31, 0.0 }
 0x1b6   : > { %v1324_v30 = vadd.f32 %v3300_v55, %v1275_v36  ;;  %v1362_v8 = vpop.f32.mrf.mxu3 }
 0x1b7   : > { %v1518_v49 = vpack.c.bf16 %v1488_v21, %v1486_v41  ;;  %v1363_v46 = vadd.f32 %v1362_v8, %v3395_v32 }
 0x1b8   : > { %v1505_v37 = vmax.f32 %v1324_v30, 0.0 }
 0x1b9   : > { %1722 = vmatmul.bf16.vlgmr.msrb.gmra.mxu3 %v1518_v49  ;;  %v1412_v23 = vadd.f32 %v1411_v53, %v1363_v46 }
 0x1ba   : > { %v1450_v12 = vpop.f32.mrf.mxu0 }
 0x1bb   : > { %v1276_v3 = vpop.f32.mrf.mxu1  ;;  %v1451_v63 = vadd.f32 %v1450_v12, %v1402_v17 }
 0x1bc   : > { %v1277_v52 = vadd.f32 %v1276_v3, %v1228_v40 }
 0x1bd   : > { %v1490_v55 = vmax.f32 %v1451_v63, 0.0 }
 0x1be   : > { %v1326_v44 = vadd.f32 %v3311_v39, %v1277_v52  ;;  %v1364_v59 = vpop.f32.mrf.mxu3 }
 0x1bf   : > { %v1365_v40 = vadd.f32 %v1364_v59, %v3395_v32 }
 0x1c0   : > { %v1507_v4 = vmax.f32 %v1326_v44, 0.0 }
 0x1c1   : > { %v1414_v30 = vadd.f32 %v1413_v11, %v1365_v40 }
 0x1c2   : > { %v1452_v29 = vpop.f32.mrf.mxu0  ;;  %v1527_v56 = vpack.c.bf16 %v1507_v4, %v1505_v37 }
 0x1c3   : > { %v1453_v45 = vadd.f32 %v1452_v29, %v1404_v50  ;;  %v1279_v43 = vpop.f32.mrf.mxu1 }
 0x1c4   : > { %1698 = vmatmul.bf16.gmra.mxu1 %v1527_v56  ;;  %v1280_v42 = vadd.f32 %v1279_v43, %v1231_v47 }
 0x1c5   : > { %v1492_v57 = vmax.f32 %v1453_v45, 0.0 }
 0x1c6   : > { %v1329_v19 = vadd.f32 %v3325_v48, %v1280_v42  ;;  %v1367_v28 = vpop.f32.mrf.mxu3 }
 0x1c7   : > { %v1520_v39 = vpack.c.bf16 %v1492_v57, %v1490_v55  ;;  %v1368_v50 = vadd.f32 %v1367_v28, %v3395_v32 }
 0x1c8   : > { %v1509_v6 = vmax.f32 %v1329_v19, 0.0 }
 0x1c9   : > { %1727 = vmatmul.bf16.gmra.mxu3 %v1520_v39 }
 0x1ca   : > { %v1455_v51 = vpop.f32.mrf.mxu0 }
 0x1cb   : > { %v1281_v0 = vpop.f32.mrf.mxu1  ;;  %v1456_v22 = vadd.f32 %v1455_v51, %v1407_v35 }
 0x1cc   : > { %v1282_v18 = vadd.f32 %v1281_v0, %v1233_v54 }
 0x1cd   : > { %v1494_v25 = vmax.f32 %v1456_v22, 0.0 }
 0x1ce   : > { %v1331_v10 = vadd.f32 %v3335_v38, %v1282_v18  ;;  %v1416_v38 = vpop.f32.mrf.mxu2  ;;  %v1369_v27 = vpop.f32.mrf.mxu3 }
 0x1cf   : > { %v1370_v63 = vadd.f32 %v1369_v27, %v3395_v32  ;;  %v1417_v8 = vadd.f32 %v1416_v38, %v1368_v50 }
 0x1d0   : > { %v1511_v61 = vmax.f32 %v1331_v10, 0.0 }
 0x1d2   : > { %v1457_v16 = vpop.f32.mrf.mxu0  ;;  %v1529_v34 = vpack.c.bf16 %v1511_v61, %v1509_v6 }
 0x1d3   : > { %v1458_v13 = vadd.f32 %v1457_v16, %v1409_v20  ;;  %v1284_v62 = vpop.f32.mrf.mxu1 }
 0x1d4   : > { %1703 = vmatmul.bf16.gmra.mxu1 %v1529_v34  ;;  %v1285_v33 = vadd.f32 %v1284_v62, %v1236_v7 }
 0x1d5   : > { %v1496_v48 = vmax.f32 %v1458_v13, 0.0 }
 0x1d6   : > { %v1334_v5 = vadd.f32 %v3348_v14, %v1285_v33  ;;  %v1418_v58 = vpop.f32.mrf.mxu2  ;;  %v1372_v37 = vpop.f32.mrf.mxu3 }
 0x1d7   : > { %v1522_v31 = vpack.c.bf16 %v1496_v48, %v1494_v25  ;;  %v1419_v29 = vadd.f32 %v1418_v58, %v1370_v63  ;;  %v1373_v54 = vadd.f32 %v1372_v37, %v3395_v32 }
 0x1d8   : > { %v1513_v12 = vmax.f32 %v1334_v5, 0.0 }
 0x1d9   : > { %1732 = vmatmul.bf16.gmra.mxu3 %v1522_v31 }
 0x1da   : > { %v1460_v41 = vpop.f32.mrf.mxu0 }
 0x1db   : > { %v1286_v21 = vpop.f32.mrf.mxu1  ;;  %v1461_v52 = vadd.f32 %v1460_v41, %v1412_v23 }
 0x1dc   : > { %v1287_v49 = vadd.f32 %v1286_v21, %v1238_v15 }
 0x1dd   : > { %v1498_v26 = vmax.f32 %v1461_v52, 0.0 }
 0x1de   : > { %v1336_v36 = vadd.f32 %v3361_v9, %v1287_v49  ;;  %v1421_v9 = vpop.f32.mrf.mxu2  ;;  %v1374_v53 = vpop.f32.mrf.mxu3 }
 0x1df   : > { %v1375_v0 = vadd.f32 %v1374_v53, %v3395_v32  ;;  %v1422_v59 = vadd.f32 %v1421_v9, %v1373_v54 }
 0x1e0   : > { %v1515_v3 = vmax.f32 %v1336_v36, 0.0 }
 0x1e2   : > { %v1462_v44 = vpop.f32.mrf.mxu0  ;;  %v1531_v2 = vpack.c.bf16 %v1515_v3, %v1513_v12 }
 0x1e3   : > { %v1463_v60 = vadd.f32 %v1462_v44, %v1414_v30 }
 0x1e4   : > { %1708 = vmatmul.bf16.gmra.mxu1 %v1531_v2 }
 0x1e5   : > { %v1500_v14 = vmax.f32 %v1463_v60, 0.0 }
 0x1e6   : > { %v1423_v47 = vpop.f32.mrf.mxu2  ;;  %v1377_v51 = vpop.f32.mrf.mxu3 }
 0x1e7   : > { %v1524_v17 = vpack.c.bf16 %v1500_v14, %v1498_v26  ;;  %v1424_v18 = vadd.f32 %v1423_v47, %v1375_v0  ;;  %v1378_v16 = vadd.f32 %v1377_v51, %v3395_v32  ;;  %v3438_v14 = vld [vmem:[%s3521_s4] ss:$0 sm:$0xff] }
 0x1e9   : > { %1737 = vmatmul.bf16.gmra.mxu3 %v1524_v17 }
 0x1ea   : > { %v1465_v4 = vpop.f32.mrf.mxu0 }
 0x1eb   : > { %v1466_v56 = vadd.f32 %v1465_v4, %v1417_v8 }
 0x1ed   : > { %v1502_v55 = vmax.f32 %v1466_v56, 0.0 }
 0x1ee   : > { %v1426_v19 = vpop.f32.mrf.mxu2  ;;  %v1379_v61 = vpop.f32.mrf.mxu3 }
 0x1ef   : > { %v1380_v34 = vadd.f32 %v1379_v61, %v3395_v32  ;;  %v1427_v13 = vadd.f32 %v1426_v19, %v1378_v16 }
 0x1f1   : > { %v1674_v41 = vpop.f32.mrf.mxu1 }
 0x1f2   : > { %v1467_v45 = vpop.f32.mrf.mxu0  ;;  %v1675_v17 = vadd.f32 %v3438_v14, %v1674_v41 }
 0x1f3   : > { %v1468_v43 = vadd.f32 %v1467_v45, %v1419_v29 }
 0x1f5   : > { %v1504_v57 = vmax.f32 %v1468_v43, 0.0 }
 0x1f6   : > { %v1428_v20 = vpop.f32.mrf.mxu2  ;;  %v1382_v48 = vpop.f32.mrf.mxu3 }
 0x1f7   : > { %v1526_v39 = vpack.c.bf16 %v1504_v57, %v1502_v55  ;;  %v1429_v62 = vadd.f32 %v1428_v20, %v1380_v34  ;;  %v1383_v49 = vadd.f32 %v1382_v48, %v3395_v32 }
 0x1f9   : > { %1742 = vmatmul.bf16.gmra.mxu3 %v1526_v39  ;;  %v1676_v30 = vpop.f32.mrf.mxu1 }
 0x1fa   : > { %v1470_v42 = vpop.f32.mrf.mxu0  ;;  %v1677_v37 = vadd.f32 %v3438_v14, %v1676_v30 }
 0x1fb   : > { %v1471_v24 = vadd.f32 %v1470_v42, %v1422_v59 }
 0x1fd   : > { %v1506_v1 = vmax.f32 %v1471_v24, 0.0 }
 0x1fe   : > { %v1431_v31 = vpop.f32.mrf.mxu2  ;;  %v1384_v5 = vpop.f32.mrf.mxu3 }
 0x1ff   : > { %v1385_v36 = vadd.f32 %v1384_v5, %v3395_v32  ;;  %v1432_v40 = vadd.f32 %v1431_v31, %v1383_v49 }
 0x201   : > { %v1679_v2 = vpop.f32.mrf.mxu1 }
 0x202   : > { %v1472_v11 = vpop.f32.mrf.mxu0  ;;  %v1680_v56 = vadd.f32 %v3438_v14, %v1679_v2 }
 0x203   : > { %v1473_v10 = vadd.f32 %v1472_v11, %v1424_v18 }
 0x205   : > { %v1508_v35 = vmax.f32 %v1473_v10, 0.0 }
 0x206   : > { %v1433_v46 = vpop.f32.mrf.mxu2 }
 0x207   : > { %v1528_v6 = vpack.c.bf16 %v1508_v35, %v1506_v1  ;;  %v1434_v23 = vadd.f32 %v1433_v46, %v1385_v36 }
 0x209   : > { %1747 = vmatmul.bf16.gmra.mxu3 %v1528_v6  ;;  %v1681_v60 = vpop.f32.mrf.mxu1 }
 0x20a   : > { %v1475_v22 = vpop.f32.mrf.mxu0  ;;  %v1682_v45 = vadd.f32 %v3438_v14, %v1681_v60 }
 0x20b   : > { %v1476_v25 = vadd.f32 %v1475_v22, %v1427_v13 }
 0x20d   : > { %v1510_v38 = vmax.f32 %v1476_v25, 0.0 }
 0x211   : > { %v1684_v32 = vpop.f32.mrf.mxu1 }
 0x212   : > { %v1477_v28 = vpop.f32.mrf.mxu0  ;;  %v1685_v54 = vadd.f32 %v3438_v14, %v1684_v32 }
 0x213   : > { %v1478_v7 = vadd.f32 %v1477_v28, %v1429_v62 }
 0x215   : > { %v1512_v33 = vmax.f32 %v1478_v7, 0.0 }
 0x217   : > { %v1530_v15 = vpack.c.bf16 %v1512_v33, %v1510_v38 }
 0x219   : > { %1752 = vmatmul.bf16.gmra.mxu3 %v1530_v15  ;;  %v1686_v8 = vpop.f32.mrf.mxu1 }
 0x21a   : > { %v1480_v21 = vpop.f32.mrf.mxu0  ;;  %v1687_v51 = vadd.f32 %v3438_v14, %v1686_v8 }
 0x21b   : > { %v1481_v27 = vadd.f32 %v1480_v21, %v1432_v40 }
 0x21d   : > { %v1514_v52 = vmax.f32 %v1481_v27, 0.0 }
 0x221   : > { %v1689_v57 = vpop.f32.mrf.mxu1 }
 0x222   : > { %v1482_v12 = vpop.f32.mrf.mxu0  ;;  %v1690_v10 = vadd.f32 %v3438_v14, %v1689_v57 }
 0x223   : > { %v1483_v3 = vadd.f32 %v1482_v12, %v1434_v23 }
 0x225   : > { %v1516_v58 = vmax.f32 %v1483_v3, 0.0 }
 0x227   : > { %v1532_v44 = vpack.c.bf16 %v1516_v58, %v1514_v52 }
 0x229   : > { %1757 = vmatmul.bf16.gmra.mxu3 %v1532_v44  ;;  %v1691_v42 = vpop.f32.mrf.mxu1 }
 0x22a   : > { %v1692_v1 = vadd.f32 %v3438_v14, %v1691_v42 }
 0x231   : > { %v1694_v24 = vpop.f32.mrf.mxu1 }
 0x232   : > { %v1695_v13 = vadd.f32 %v3438_v14, %v1694_v24 }
 0x239   : > { %v1696_v35 = vpop.f32.mrf.mxu1 }
 0x23a   : > { %v1697_v62 = vadd.f32 %v3438_v14, %v1696_v35 }
 0x23c   : > { %v1723_v26 = vpop.f32.mrf.mxu3 }
 0x23d   : > { %v1724_v9 = vadd.f32 %v1723_v26, %v1675_v17 }
 0x241   : > { %v1699_v34 = vpop.f32.mrf.mxu1 }
 0x242   : > { %v1700_v15 = vadd.f32 %v3438_v14, %v1699_v34 }
 0x244   : > { %v1725_v4 = vpop.f32.mrf.mxu3 }
 0x245   : > { %v1726_v50 = vadd.f32 %v1725_v4, %v1677_v37 }
 0x247   : > { %v2250_v63 = vpack.c.bf16 %v1726_v50, %v1724_v9 }
 0x249   : > { %2251 = vst [vmem:[%s3445_s26] sm:$0xff] %v2250_v63   ;;  %v1701_v31 = vpop.f32.mrf.mxu1 }
 0x24a   : > { %v1702_v41 = vadd.f32 %v3438_v14, %v1701_v31 }
 0x24c   : > { %v1728_v29 = vpop.f32.mrf.mxu3 }
 0x24d   : > { %v1729_v53 = vadd.f32 %v1728_v29, %v1680_v56 }
 0x251   : > { %v1704_v33 = vpop.f32.mrf.mxu1 }
 0x252   : > { %v1705_v23 = vadd.f32 %v3438_v14, %v1704_v33 }
 0x254   : > { %v1730_v43 = vpop.f32.mrf.mxu3 }
 0x255   : > { %v1731_v55 = vadd.f32 %v1730_v43, %v1682_v45 }
 0x257   : > { %v2255_v47 = vpack.c.bf16 %v1731_v55, %v1729_v53 }
 0x259   : > { %2287 = vst [vmem:[%s3445_s26 + $0x8] sm:$0xff] %v2255_v47   ;;  %v1706_v36 = vpop.f32.mrf.mxu1 }
 0x25a   : > { %v1707_v27 = vadd.f32 %v3438_v14, %v1706_v36 }
 0x25c   : > { %v1733_v39 = vpop.f32.mrf.mxu3 }
 0x25d   : > { %v1734_v59 = vadd.f32 %v1733_v39, %v1685_v54 }
 0x261   : > { %v1709_v52 = vpop.f32.mrf.mxu1 }
 0x262   : > { %v1710_v60 = vadd.f32 %v3438_v14, %v1709_v52 }
 0x264   : > { %v1735_v0 = vpop.f32.mrf.mxu3 }
 0x265   : > { %v1736_v19 = vadd.f32 %v1735_v0, %v1687_v51 }
 0x267   : > { %v2260_v18 = vpack.c.bf16 %v1736_v19, %v1734_v59 }
 0x269   : > { %2288 = vst [vmem:[%s3445_s26 + $0x10] sm:$0xff] %v2260_v18   ;;  %v1711_v2 = vpop.f32.mrf.mxu1 }
 0x26a   : > { %v1712_v26 = vadd.f32 %v3438_v14, %v1711_v2 }
 0x26c   : > { %v1738_v11 = vpop.f32.mrf.mxu3 }
 0x26d   : > { %v1739_v61 = vadd.f32 %v1738_v11, %v1690_v10 }
 0x274   : > { %v1740_v6 = vpop.f32.mrf.mxu3 }
 0x275   : > { %v1741_v20 = vadd.f32 %v1740_v6, %v1692_v1 }
 0x277   : > { %v2265_v22 = vpack.c.bf16 %v1741_v20, %v1739_v61 }
 0x279   : > { %2289 = vst [vmem:[%s3445_s26 + $0x18] sm:$0xff] %v2265_v22  }
 0x27c   : > { %v1743_v16 = vpop.f32.mrf.mxu3 }
 0x27d   : > { %v1744_v48 = vadd.f32 %v1743_v16, %v1695_v13 }
 0x284   : > { %v1745_v25 = vpop.f32.mrf.mxu3 }
 0x285   : > { %v1746_v28 = vadd.f32 %v1745_v25, %v1697_v62 }
 0x287   : > { %v2270_v7 = vpack.c.bf16 %v1746_v28, %v1744_v48 }
 0x289   : > { %2290 = vst [vmem:[%s3445_s26 + $0x20] sm:$0xff] %v2270_v7  }
 0x28c   : > { %v1748_v38 = vpop.f32.mrf.mxu3 }
 0x28d   : > { %v1749_v5 = vadd.f32 %v1748_v38, %v1700_v15 }
 0x294   : > { %v1750_v21 = vpop.f32.mrf.mxu3 }
 0x295   : > { %v1751_v49 = vadd.f32 %v1750_v21, %v1702_v41 }
 0x297   : > { %v2275_v46 = vpack.c.bf16 %v1751_v49, %v1749_v5 }
 0x299   : > { %2291 = vst [vmem:[%s3445_s26 + $0x28] sm:$0xff] %v2275_v46  }
 0x29c   : > { %v1753_v40 = vpop.f32.mrf.mxu3 }
 0x29d   : > { %v1754_v3 = vadd.f32 %v1753_v40, %v1705_v23 }
 0x2a4   : > { %v1755_v12 = vpop.f32.mrf.mxu3 }
 0x2a5   : > { %v1756_v30 = vadd.f32 %v1755_v12, %v1707_v27 }
 0x2a7   : > { %v2280_v58 = vpack.c.bf16 %v1756_v30, %v1754_v3 }
 0x2a9   : > { %2292 = vst [vmem:[%s3445_s26 + $0x30] sm:$0xff] %v2280_v58  }
 0x2ac   : > { %v1758_v44 = vpop.f32.mrf.mxu3 }
 0x2ad   : > { %v1759_v17 = vadd.f32 %v1758_v44, %v1710_v60 }
 0x2b4   : > { %v1760_v32 = vpop.f32.mrf.mxu3 }
 0x2b5   : > { %v1761_v37 = vadd.f32 %v1760_v32, %v1712_v26 }
 0x2b7   : > { %v2285_v4 = vpack.c.bf16 %v1761_v37, %v1759_v17 }
 0x2b9   : > { %2293 = vst [vmem:[%s3445_s26 + $0x38] sm:$0xff] %v2285_v4  }
 0x2ba   : > { %2399 = shalt.err (!%p2396_p7)
}
 0x2bb   : > { %s2471_s16 = smov 4  }
 0x2bc   : > { %2296 = dma.vmem_to_hbm [thread:$0]  (%p2553_p3), %s1811_s10, 1024, %s1813_s21, %s1796_s22, %s3541_s9, %s3541_s9, %s2471_s16  }
 0x2bd PF: > { %p2302_p9 = scmp.ge.s32.totalorder %s2466_s25, 2  ;;  %s1827_s26 = sand.u32 1, %s2438_s18  }
 0x2be   : > { %s1828_s13 = scalar_lea.sflag [#allocation3], %s1827_s26 }
 0x2bf   : > { %p2299_p10 = pnand %p2302_p9, %p2562_p8 }
 0x2c1   : > { %p2300_p11 = pneg %p2299_p10 }
 0x2c3   : > { %2433 = dma.done.wait (%p2300_p11), %s1828_s13, 1024  }
 0x2c4   : > { %2435 = vsyncadd (%p2300_p11), %s1828_s13, 4294966272  ;;  %s18_s25 = sadd.s32 1, %s2466_s25   ;;  %s3542_s6 = sld [smem:[#allocation5_spill]] }
 0x2c5   : > { %p15_p12 = scmp.ge.s32.totalorder %s18_s25, 6   ;;  %s3543_s18 = smov %s2442_s19 }
 0x2c6   : > { %s3544_s19 = smov %s2446_s20  ;;  %s3545_s20 = smov %s2571_s11 }
 0x2c7   : > { %s3546_s21 = smov %s2458_s23  ;;  %s3547_s22 = smov %s2462_s24 }
 0x2c8   : > { %s3548_s23 = smov %s3551_s28  ;;  %17 = sbr.rel (!%p15_p12) target bundleno = 7 (0x7), region = 75 }
 0x2ca   : > { %s3549_s24 = smov %s3542_s6 }
 0x2cd   :  { %1834 = vsyncpa [#allocation3], 1 }
 0x2ce   :  { %1836 = vsyncpa [#allocation3 + $0x1], 1 }

</bundles_post_ra>
